<compile_context>
chip_gen: v7x
topology: tpu7x:2x2x1
jax: 0.10.0
libtpu: 0.0.40
codegen_flags: <defaults>
</compile_context>

<pallas_src>
import jax
import jax.numpy as jnp
from jax import lax
from jax.experimental import pallas as pl
from jax.experimental.pallas import tpu as pltpu

EPS = 1e-5


# ---------------------------------------------------------------------------
# In-kernel helpers
# ---------------------------------------------------------------------------
def _sn_relu(x2, n, c, hw, gamma, beta, mw, vw):
    """SwitchNorm2d (training, using_bn=True) + ReLU on (n*c, hw) channel-major data."""
    x3 = x2.reshape(n, c, hw)                                   # leading-dim split: free
    mean_in = jnp.mean(x3, axis=-1, keepdims=True)              # (n,c,1) lane reductions
    diff = x3 - mean_in
    var_in = jnp.sum(diff * diff, axis=-1, keepdims=True) * (1.0 / (hw - 1))  # unbiased
    temp = var_in + mean_in * mean_in
    mean_ln = jnp.mean(mean_in, axis=1, keepdims=True)          # (n,1,1)
    var_ln = jnp.mean(temp, axis=1, keepdims=True) - mean_ln * mean_ln
    mean_bn = jnp.mean(mean_in, axis=0, keepdims=True)          # (1,c,1)
    var_bn = jnp.mean(temp, axis=0, keepdims=True) - mean_bn * mean_bn
    mean = mw[0] * mean_in + mw[1] * mean_ln + mw[2] * mean_bn
    var = vw[0] * var_in + vw[1] * var_ln + vw[2] * var_bn
    var = jnp.maximum(var, 0.0)                                 # guard f32 cancellation
    # Fold gamma/beta into one per-(n,c) scale/shift: the big (n,c,hw) tensor
    # only does mul + add + max.  rsqrt -> EUP, no f32 divide.
    scale = gamma[None] * lax.rsqrt(var + EPS)                  # (n,c,1)
    shift = beta[None] - mean * scale                           # (n,c,1)
    out = jnp.maximum(x3 * scale + shift, 0.0)
    return out.reshape(n * c, hw)                               # leading-dim merge: free


def _shift_lanes(x, off):
    """result[..., i] = x[..., i + off]  (zero fill out of range); off is a python int."""
    if off == 0:
        return x
    L = x.shape[-1]
    zeros = jnp.zeros(x.shape[:-1] + (abs(off),), x.dtype)
    if off > 0:
        return jnp.concatenate([x[..., off:], zeros], axis=-1)
    return jnp.concatenate([zeros, x[..., :L + off]], axis=-1)


# ---------------------------------------------------------------------------
# Fused Bottleneck kernel
# ---------------------------------------------------------------------------
def make_bottleneck_kernel(N, Cin, P, H, W):
    HW = H * W
    NP = N * P

    def kernel(x_ref, w1_ref, w2_ref, w3_ref,
               g1_ref, b1_ref, g2_ref, b2_ref, g3_ref, b3_ref,
               mw_ref, vw_ref, o_ref, col_ref):
        x2 = x_ref[...]                                         # (N*Cin, HW)

        def mw(i):
            return (mw_ref[i, 0], mw_ref[i, 1], mw_ref[i, 2])

        def vw(i):
            return (vw_ref[i, 0], vw_ref[i, 1], vw_ref[i, 2])

        # SN1 + ReLU
        a1 = _sn_relu(x2, N, Cin, HW, g1_ref[...], b1_ref[...], mw(0), vw(0))
        # conv1 (1x1): one batch-wide 2D MXU matmul, block-diagonal weights
        y1 = jnp.dot(w1_ref[...], a1, preferred_element_type=jnp.float32)   # (N*P, HW)
        # SN2 + ReLU
        a2 = _sn_relu(y1, N, P, HW, g2_ref[...], b2_ref[...], mw(1), vw(1))

        # conv2 (3x3, pad=1, stride=1): im2col into VMEM scratch, one matmul.
        #   column (w) boundaries -> 3 pre-masked +/-1 lane-shifted copies
        #   row (h) boundaries    -> zero fill of the +/-W lane shift is exact
        w_idx = lax.broadcasted_iota(jnp.int32, (1, HW), 1) % W
        base = {
            -1: jnp.where(w_idx >= 1, _shift_lanes(a2, -1), 0.0),
            0: a2,
            1: jnp.where(w_idx < W - 1, _shift_lanes(a2, 1), 0.0),
        }
        for dy in range(3):
            for dx in range(3):
                k = dy * 3 + dx
                col_ref[pl.ds(k * NP, NP), :] = _shift_lanes(base[dx - 1], (dy - 1) * W)
        y2 = jnp.dot(w2_ref[...], col_ref[...],
                     preferred_element_type=jnp.float32)                    # (N*P, HW)

        # SN3 + ReLU
        a3 = _sn_relu(y2, N, P, HW, g3_ref[...], b3_ref[...], mw(2), vw(2))
        # conv3 (1x1) + identity residual (inplanes == planes*4, downsample=None)
        y3 = jnp.dot(w3_ref[...], a3, preferred_element_type=jnp.float32)   # (N*4P, HW)
        o_ref[...] = y3 + x2

    return kernel


# ---------------------------------------------------------------------------
# Wrapper
# ---------------------------------------------------------------------------
def bottleneck_forward(x_nchw, params):
    N, Cin, H, W = x_nchw.shape
    P = params["w1_oihw"].shape[0]
    Cout = 4 * P
    assert Cout == Cin, "identity residual requires inplanes == planes*4"
    HW = H * W

    # Host-side parameter prep (tiny, one-time).  Block-diagonal (kron) weights
    # let the whole batch go through a single 2D matmul per conv.
    f32 = jnp.float32
    eye = jnp.eye(N, dtype=f32)
    w1 = params["w1_oihw"].reshape(P, Cin).astype(f32)
    w3 = params["w3_oihw"].reshape(Cout, P).astype(f32)
    w2 = params["w2_oihw"].astype(f32)                              # (P, P, 3, 3)
    w1big = jnp.kron(eye, w1)                                       # (N*P, N*Cin)
    w3big = jnp.kron(eye, w3)                                       # (N*Cout, N*P)
    w2big = jnp.concatenate(
        [jnp.kron(eye, w2[:, :, dy, dx]) for dy in range(3) for dx in range(3)],
        axis=1)                                                     # (N*P, 9*N*P)

    mw = jnp.stack([jax.nn.softmax(params[f"sn{i}_mw"].astype(f32)) for i in (1, 2, 3)])
    vw = jnp.stack([jax.nn.softmax(params[f"sn{i}_vw"].astype(f32)) for i in (1, 2, 3)])

    g1 = params["sn1_w"].reshape(Cin, 1).astype(f32)
    b1 = params["sn1_b"].reshape(Cin, 1).astype(f32)
    g2 = params["sn2_w"].reshape(P, 1).astype(f32)
    b2 = params["sn2_b"].reshape(P, 1).astype(f32)
    g3 = params["sn3_w"].reshape(P, 1).astype(f32)
    b3 = params["sn3_b"].reshape(P, 1).astype(f32)

    x2 = x_nchw.reshape(N * Cin, HW).astype(f32)                    # free NCHW reshape

    vmem = pl.BlockSpec(memory_space=pltpu.MemorySpace.VMEM)
    smem = pl.BlockSpec(memory_space=pltpu.MemorySpace.SMEM)
    out2 = pl.pallas_call(
        make_bottleneck_kernel(N, Cin, P, H, W),
        out_shape=jax.ShapeDtypeStruct((N * Cout, HW), jnp.float32),
        in_specs=[vmem] * 10 + [smem, smem],
        out_specs=vmem,
        scratch_shapes=[pltpu.VMEM((9 * N * P, HW), jnp.float32)],  # im2col buffer
    )(x2, w1big, w2big, w3big, g1, b1, g2, b2, g3, b3, mw, vw)
    return out2.reshape(N, Cout, H, W)                              # free reshape back


# ---------------------------------------------------------------------------
# Pure-JAX reference (mirrors the PyTorch module, training mode)
# ---------------------------------------------------------------------------
def sn_relu_ref(x, gamma, beta, mw, vw):
    N, C, H, W = x.shape
    xr = x.reshape(N, C, -1)
    mean_in = xr.mean(-1, keepdims=True)
    var_in = xr.var(-1, ddof=1, keepdims=True)
    mean_ln = mean_in.mean(1, keepdims=True)
    temp = var_in + mean_in ** 2
    var_ln = temp.mean(1, keepdims=True) - mean_ln ** 2
    mean_bn = mean_in.mean(0, keepdims=True)
    var_bn = temp.mean(0, keepdims=True) - mean_bn ** 2
    mws = jax.nn.softmax(mw)
    vws = jax.nn.softmax(vw)
    mean = mws[0] * mean_in + mws[1] * mean_ln + mws[2] * mean_bn
    var = vws[0] * var_in + vws[1] * var_ln + vws[2] * var_bn
    xn = (xr - mean) / jnp.sqrt(var + EPS)
    out = xn.reshape(N, C, H, W) * gamma.reshape(1, C, 1, 1) + beta.reshape(1, C, 1, 1)
    return jnp.maximum(out, 0.0)


def conv_ref(x, w, pad):
    return lax.conv_general_dilated(x, w, (1, 1), pad,
                                    dimension_numbers=("NCHW", "OIHW", "NCHW"))


def bottleneck_ref(x, p):
    out = sn_relu_ref(x, p["sn1_w"], p["sn1_b"], p["sn1_mw"], p["sn1_vw"])
    out = conv_ref(out, p["w1_oihw"], [(0, 0), (0, 0)])
    out = sn_relu_ref(out, p["sn2_w"], p["sn2_b"], p["sn2_mw"], p["sn2_vw"])
    out = conv_ref(out, p["w2_oihw"], [(1, 1), (1, 1)])
    out = sn_relu_ref(out, p["sn3_w"], p["sn3_b"], p["sn3_mw"], p["sn3_vw"])
    out = conv_ref(out, p["w3_oihw"], [(0, 0), (0, 0)])
    return out + x


# ---------------------------------------------------------------------------
# Main
# ---------------------------------------------------------------------------
if __name__ == "__main__":
    N, P, H, W = 2, 4, 16, 16
    Cin = 4 * P                      # inplanes == planes * expansion (stride=1, no downsample)

    keys = iter(jax.random.split(jax.random.PRNGKey(0), 16))
    x = jax.random.normal(next(keys), (N, Cin, H, W), dtype=jnp.float32)

    params = {
        "w1_oihw": 0.1 * jax.random.normal(next(keys), (P, Cin, 1, 1), dtype=jnp.float32),
        "w2_oihw": 0.1 * jax.random.normal(next(keys), (P, P, 3, 3), dtype=jnp.float32),
        "w3_oihw": 0.1 * jax.random.normal(next(keys), (4 * P, P, 1, 1), dtype=jnp.float32),
    }
    for i, c in ((1, Cin), (2, P), (3, P)):
        params[f"sn{i}_w"] = 1.0 + 0.1 * jax.random.normal(next(keys), (c,), dtype=jnp.float32)
        params[f"sn{i}_b"] = 0.1 * jax.random.normal(next(keys), (c,), dtype=jnp.float32)
        params[f"sn{i}_mw"] = jax.random.normal(next(keys), (3,), dtype=jnp.float32)
        params[f"sn{i}_vw"] = jax.random.normal(next(keys), (3,), dtype=jnp.float32)

    out = jax.block_until_ready(bottleneck_forward(x, params))
    ref = bottleneck_ref(x, params)

    assert out.shape == (N, 4 * P, H, W)
    err = float(jnp.max(jnp.abs(out - ref)))
    assert jnp.allclose(out, ref, atol=2e-3, rtol=2e-3), f"max abs err {err}"
    print("KERNEL_OK")
</pallas_src>

<mosaic_0001>
module attributes {stable_mosaic.version = 11 : i64} {
  func.func @kernel(%arg0: memref<32x256xf32, #tpu.memory_space<vmem>>, %arg1: memref<8x32xf32, #tpu.memory_space<vmem>>, %arg2: memref<8x72xf32, #tpu.memory_space<vmem>>, %arg3: memref<32x8xf32, #tpu.memory_space<vmem>>, %arg4: memref<16x1xf32, #tpu.memory_space<vmem>>, %arg5: memref<16x1xf32, #tpu.memory_space<vmem>>, %arg6: memref<4x1xf32, #tpu.memory_space<vmem>>, %arg7: memref<4x1xf32, #tpu.memory_space<vmem>>, %arg8: memref<4x1xf32, #tpu.memory_space<vmem>>, %arg9: memref<4x1xf32, #tpu.memory_space<vmem>>, %arg10: memref<3x3xf32, #tpu.memory_space<smem>>, %arg11: memref<3x3xf32, #tpu.memory_space<smem>>, %arg12: memref<32x256xf32, #tpu.memory_space<vmem>>, %arg13: memref<72x256xf32, #tpu.memory_space<vmem>>) attributes {dimension_semantics = [], scalar_prefetch = 0 : i64, scratch_operands = 1 : i64, tpu.core_type = #tpu.core_type<tc>} {
    %c0 = arith.constant 0 : index
    %c0_0 = arith.constant 0 : index
    %0 = vector.load %arg0[%c0, %c0_0] : memref<32x256xf32, #tpu.memory_space<vmem>>, vector<32x256xf32>
    %c0_1 = arith.constant 0 : index
    %c0_2 = arith.constant 0 : index
    %1 = vector.load %arg4[%c0_1, %c0_2] : memref<16x1xf32, #tpu.memory_space<vmem>>, vector<16x1xf32>
    %c0_3 = arith.constant 0 : index
    %c0_4 = arith.constant 0 : index
    %2 = vector.load %arg5[%c0_3, %c0_4] : memref<16x1xf32, #tpu.memory_space<vmem>>, vector<16x1xf32>
    %c0_5 = arith.constant 0 : index
    %c0_6 = arith.constant 0 : index
    %3 = memref.load %arg10[%c0_5, %c0_6] : memref<3x3xf32, #tpu.memory_space<smem>>
    %c0_7 = arith.constant 0 : index
    %c1 = arith.constant 1 : index
    %4 = memref.load %arg10[%c0_7, %c1] : memref<3x3xf32, #tpu.memory_space<smem>>
    %c0_8 = arith.constant 0 : index
    %c2 = arith.constant 2 : index
    %5 = memref.load %arg10[%c0_8, %c2] : memref<3x3xf32, #tpu.memory_space<smem>>
    %c0_9 = arith.constant 0 : index
    %c0_10 = arith.constant 0 : index
    %6 = memref.load %arg11[%c0_9, %c0_10] : memref<3x3xf32, #tpu.memory_space<smem>>
    %c0_11 = arith.constant 0 : index
    %c1_12 = arith.constant 1 : index
    %7 = memref.load %arg11[%c0_11, %c1_12] : memref<3x3xf32, #tpu.memory_space<smem>>
    %c0_13 = arith.constant 0 : index
    %c2_14 = arith.constant 2 : index
    %8 = memref.load %arg11[%c0_13, %c2_14] : memref<3x3xf32, #tpu.memory_space<smem>>
    %9 = vector.shape_cast %0 : vector<32x256xf32> to vector<2x16x256xf32>
    %cst = arith.constant dense<0.000000e+00> : vector<2x16xf32>
    %10 = vector.multi_reduction <add>, %9, %cst [2] : vector<2x16x256xf32> to vector<2x16xf32>
    %11 = vector.shape_cast %10 : vector<2x16xf32> to vector<2x16x1xf32>
    %cst_15 = arith.constant 2.560000e+02 : f32
    %12 = vector.broadcast %cst_15 : f32 to vector<2x16x1xf32>
    %13 = arith.divf %11, %12 : vector<2x16x1xf32>
    %14 = vector.broadcast %13 : vector<2x16x1xf32> to vector<2x16x256xf32>
    %15 = arith.subf %9, %14 : vector<2x16x256xf32>
    %16 = arith.mulf %15, %15 : vector<2x16x256xf32>
    %cst_16 = arith.constant dense<0.000000e+00> : vector<2x16xf32>
    %17 = vector.multi_reduction <add>, %16, %cst_16 [2] : vector<2x16x256xf32> to vector<2x16xf32>
    %18 = vector.shape_cast %17 : vector<2x16xf32> to vector<2x16x1xf32>
    %cst_17 = arith.constant 0.00392156886 : f32
    %19 = vector.broadcast %cst_17 : f32 to vector<2x16x1xf32>
    %20 = arith.mulf %18, %19 : vector<2x16x1xf32>
    %21 = arith.mulf %13, %13 : vector<2x16x1xf32>
    %22 = arith.addf %20, %21 : vector<2x16x1xf32>
    %cst_18 = arith.constant dense<0.000000e+00> : vector<2x1xf32>
    %23 = vector.multi_reduction <add>, %13, %cst_18 [1] : vector<2x16x1xf32> to vector<2x1xf32>
    %24 = vector.shape_cast %23 : vector<2x1xf32> to vector<2x1x1xf32>
    %cst_19 = arith.constant 1.600000e+01 : f32
    %25 = vector.broadcast %cst_19 : f32 to vector<2x1x1xf32>
    %26 = arith.divf %24, %25 : vector<2x1x1xf32>
    %cst_20 = arith.constant dense<0.000000e+00> : vector<2x1xf32>
    %27 = vector.multi_reduction <add>, %22, %cst_20 [1] : vector<2x16x1xf32> to vector<2x1xf32>
    %28 = vector.shape_cast %27 : vector<2x1xf32> to vector<2x1x1xf32>
    %cst_21 = arith.constant 1.600000e+01 : f32
    %29 = vector.broadcast %cst_21 : f32 to vector<2x1x1xf32>
    %30 = arith.divf %28, %29 : vector<2x1x1xf32>
    %31 = arith.mulf %26, %26 : vector<2x1x1xf32>
    %32 = arith.subf %30, %31 : vector<2x1x1xf32>
    %cst_22 = arith.constant dense<0.000000e+00> : vector<16x1xf32>
    %33 = vector.multi_reduction <add>, %13, %cst_22 [0] : vector<2x16x1xf32> to vector<16x1xf32>
    %34 = vector.shape_cast %33 : vector<16x1xf32> to vector<1x16x1xf32>
    %cst_23 = arith.constant 2.000000e+00 : f32
    %35 = vector.broadcast %cst_23 : f32 to vector<1x16x1xf32>
    %36 = arith.divf %34, %35 : vector<1x16x1xf32>
    %cst_24 = arith.constant dense<0.000000e+00> : vector<16x1xf32>
    %37 = vector.multi_reduction <add>, %22, %cst_24 [0] : vector<2x16x1xf32> to vector<16x1xf32>
    %38 = vector.shape_cast %37 : vector<16x1xf32> to vector<1x16x1xf32>
    %cst_25 = arith.constant 2.000000e+00 : f32
    %39 = vector.broadcast %cst_25 : f32 to vector<1x16x1xf32>
    %40 = arith.divf %38, %39 : vector<1x16x1xf32>
    %41 = arith.mulf %36, %36 : vector<1x16x1xf32>
    %42 = arith.subf %40, %41 : vector<1x16x1xf32>
    %43 = vector.broadcast %3 : f32 to vector<2x16x1xf32>
    %44 = arith.mulf %43, %13 : vector<2x16x1xf32>
    %45 = vector.broadcast %4 : f32 to vector<2x1x1xf32>
    %46 = arith.mulf %45, %26 : vector<2x1x1xf32>
    %47 = vector.broadcast %46 : vector<2x1x1xf32> to vector<2x16x1xf32>
    %48 = arith.addf %44, %47 : vector<2x16x1xf32>
    %49 = vector.broadcast %5 : f32 to vector<1x16x1xf32>
    %50 = arith.mulf %49, %36 : vector<1x16x1xf32>
    %51 = vector.broadcast %50 : vector<1x16x1xf32> to vector<2x16x1xf32>
    %52 = arith.addf %48, %51 : vector<2x16x1xf32>
    %53 = vector.broadcast %6 : f32 to vector<2x16x1xf32>
    %54 = arith.mulf %53, %20 : vector<2x16x1xf32>
    %55 = vector.broadcast %7 : f32 to vector<2x1x1xf32>
    %56 = arith.mulf %55, %32 : vector<2x1x1xf32>
    %57 = vector.broadcast %56 : vector<2x1x1xf32> to vector<2x16x1xf32>
    %58 = arith.addf %54, %57 : vector<2x16x1xf32>
    %59 = vector.broadcast %8 : f32 to vector<1x16x1xf32>
    %60 = arith.mulf %59, %42 : vector<1x16x1xf32>
    %61 = vector.broadcast %60 : vector<1x16x1xf32> to vector<2x16x1xf32>
    %62 = arith.addf %58, %61 : vector<2x16x1xf32>
    %cst_26 = arith.constant 0.000000e+00 : f32
    %63 = vector.broadcast %cst_26 : f32 to vector<2x16x1xf32>
    %64 = arith.maximumf %62, %63 : vector<2x16x1xf32>
    %65 = vector.shape_cast %1 : vector<16x1xf32> to vector<1x16x1xf32>
    %cst_27 = arith.constant 9.99999974E-6 : f32
    %66 = vector.broadcast %cst_27 : f32 to vector<2x16x1xf32>
    %67 = arith.addf %64, %66 : vector<2x16x1xf32>
    %68 = math.rsqrt %67 : vector<2x16x1xf32>
    %69 = vector.broadcast %65 : vector<1x16x1xf32> to vector<2x16x1xf32>
    %70 = arith.mulf %69, %68 : vector<2x16x1xf32>
    %71 = vector.shape_cast %2 : vector<16x1xf32> to vector<1x16x1xf32>
    %72 = arith.mulf %52, %70 : vector<2x16x1xf32>
    %73 = vector.broadcast %71 : vector<1x16x1xf32> to vector<2x16x1xf32>
    %74 = arith.subf %73, %72 : vector<2x16x1xf32>
    %75 = vector.broadcast %70 : vector<2x16x1xf32> to vector<2x16x256xf32>
    %76 = arith.mulf %9, %75 : vector<2x16x256xf32>
    %77 = vector.broadcast %74 : vector<2x16x1xf32> to vector<2x16x256xf32>
    %78 = arith.addf %76, %77 : vector<2x16x256xf32>
    %cst_28 = arith.constant 0.000000e+00 : f32
    %79 = vector.broadcast %cst_28 : f32 to vector<2x16x256xf32>
    %80 = arith.maximumf %78, %79 : vector<2x16x256xf32>
    %81 = vector.shape_cast %80 : vector<2x16x256xf32> to vector<32x256xf32>
    %c0_29 = arith.constant 0 : index
    %c0_30 = arith.constant 0 : index
    %82 = vector.load %arg1[%c0_29, %c0_30] : memref<8x32xf32, #tpu.memory_space<vmem>>, vector<8x32xf32>
    %cst_31 = arith.constant dense<0.000000e+00> : vector<8x256xf32>
    %83 = tpu.matmul %82, %81, %cst_31 {dimension_numbers = #tpu.dot_dimension_numbers<[1], [0], [0], [1], [0, 0, 1, 1], [], []>} : vector<8x32xf32>, vector<32x256xf32>, vector<8x256xf32> -> vector<8x256xf32>
    %c0_32 = arith.constant 0 : index
    %c0_33 = arith.constant 0 : index
    %84 = vector.load %arg6[%c0_32, %c0_33] : memref<4x1xf32, #tpu.memory_space<vmem>>, vector<4x1xf32>
    %c0_34 = arith.constant 0 : index
    %c0_35 = arith.constant 0 : index
    %85 = vector.load %arg7[%c0_34, %c0_35] : memref<4x1xf32, #tpu.memory_space<vmem>>, vector<4x1xf32>
    %c1_36 = arith.constant 1 : index
    %c0_37 = arith.constant 0 : index
    %86 = memref.load %arg10[%c1_36, %c0_37] : memref<3x3xf32, #tpu.memory_space<smem>>
    %c1_38 = arith.constant 1 : index
    %c1_39 = arith.constant 1 : index
    %87 = memref.load %arg10[%c1_38, %c1_39] : memref<3x3xf32, #tpu.memory_space<smem>>
    %c1_40 = arith.constant 1 : index
    %c2_41 = arith.constant 2 : index
    %88 = memref.load %arg10[%c1_40, %c2_41] : memref<3x3xf32, #tpu.memory_space<smem>>
    %c1_42 = arith.constant 1 : index
    %c0_43 = arith.constant 0 : index
    %89 = memref.load %arg11[%c1_42, %c0_43] : memref<3x3xf32, #tpu.memory_space<smem>>
    %c1_44 = arith.constant 1 : index
    %c1_45 = arith.constant 1 : index
    %90 = memref.load %arg11[%c1_44, %c1_45] : memref<3x3xf32, #tpu.memory_space<smem>>
    %c1_46 = arith.constant 1 : index
    %c2_47 = arith.constant 2 : index
    %91 = memref.load %arg11[%c1_46, %c2_47] : memref<3x3xf32, #tpu.memory_space<smem>>
    %92 = vector.shape_cast %83 : vector<8x256xf32> to vector<2x4x256xf32>
    %cst_48 = arith.constant dense<0.000000e+00> : vector<2x4xf32>
    %93 = vector.multi_reduction <add>, %92, %cst_48 [2] : vector<2x4x256xf32> to vector<2x4xf32>
    %94 = vector.shape_cast %93 : vector<2x4xf32> to vector<2x4x1xf32>
    %cst_49 = arith.constant 2.560000e+02 : f32
    %95 = vector.broadcast %cst_49 : f32 to vector<2x4x1xf32>
    %96 = arith.divf %94, %95 : vector<2x4x1xf32>
    %97 = vector.broadcast %96 : vector<2x4x1xf32> to vector<2x4x256xf32>
    %98 = arith.subf %92, %97 : vector<2x4x256xf32>
    %99 = arith.mulf %98, %98 : vector<2x4x256xf32>
    %cst_50 = arith.constant dense<0.000000e+00> : vector<2x4xf32>
    %100 = vector.multi_reduction <add>, %99, %cst_50 [2] : vector<2x4x256xf32> to vector<2x4xf32>
    %101 = vector.shape_cast %100 : vector<2x4xf32> to vector<2x4x1xf32>
    %cst_51 = arith.constant 0.00392156886 : f32
    %102 = vector.broadcast %cst_51 : f32 to vector<2x4x1xf32>
    %103 = arith.mulf %101, %102 : vector<2x4x1xf32>
    %104 = arith.mulf %96, %96 : vector<2x4x1xf32>
    %105 = arith.addf %103, %104 : vector<2x4x1xf32>
    %cst_52 = arith.constant dense<0.000000e+00> : vector<2x1xf32>
    %106 = vector.multi_reduction <add>, %96, %cst_52 [1] : vector<2x4x1xf32> to vector<2x1xf32>
    %107 = vector.shape_cast %106 : vector<2x1xf32> to vector<2x1x1xf32>
    %cst_53 = arith.constant 4.000000e+00 : f32
    %108 = vector.broadcast %cst_53 : f32 to vector<2x1x1xf32>
    %109 = arith.divf %107, %108 : vector<2x1x1xf32>
    %cst_54 = arith.constant dense<0.000000e+00> : vector<2x1xf32>
    %110 = vector.multi_reduction <add>, %105, %cst_54 [1] : vector<2x4x1xf32> to vector<2x1xf32>
    %111 = vector.shape_cast %110 : vector<2x1xf32> to vector<2x1x1xf32>
    %cst_55 = arith.constant 4.000000e+00 : f32
    %112 = vector.broadcast %cst_55 : f32 to vector<2x1x1xf32>
    %113 = arith.divf %111, %112 : vector<2x1x1xf32>
    %114 = arith.mulf %109, %109 : vector<2x1x1xf32>
    %115 = arith.subf %113, %114 : vector<2x1x1xf32>
    %cst_56 = arith.constant dense<0.000000e+00> : vector<4x1xf32>
    %116 = vector.multi_reduction <add>, %96, %cst_56 [0] : vector<2x4x1xf32> to vector<4x1xf32>
    %117 = vector.shape_cast %116 : vector<4x1xf32> to vector<1x4x1xf32>
    %cst_57 = arith.constant 2.000000e+00 : f32
    %118 = vector.broadcast %cst_57 : f32 to vector<1x4x1xf32>
    %119 = arith.divf %117, %118 : vector<1x4x1xf32>
    %cst_58 = arith.constant dense<0.000000e+00> : vector<4x1xf32>
    %120 = vector.multi_reduction <add>, %105, %cst_58 [0] : vector<2x4x1xf32> to vector<4x1xf32>
    %121 = vector.shape_cast %120 : vector<4x1xf32> to vector<1x4x1xf32>
    %cst_59 = arith.constant 2.000000e+00 : f32
    %122 = vector.broadcast %cst_59 : f32 to vector<1x4x1xf32>
    %123 = arith.divf %121, %122 : vector<1x4x1xf32>
    %124 = arith.mulf %119, %119 : vector<1x4x1xf32>
    %125 = arith.subf %123, %124 : vector<1x4x1xf32>
    %126 = vector.broadcast %86 : f32 to vector<2x4x1xf32>
    %127 = arith.mulf %126, %96 : vector<2x4x1xf32>
    %128 = vector.broadcast %87 : f32 to vector<2x1x1xf32>
    %129 = arith.mulf %128, %109 : vector<2x1x1xf32>
    %130 = vector.broadcast %129 : vector<2x1x1xf32> to vector<2x4x1xf32>
    %131 = arith.addf %127, %130 : vector<2x4x1xf32>
    %132 = vector.broadcast %88 : f32 to vector<1x4x1xf32>
    %133 = arith.mulf %132, %119 : vector<1x4x1xf32>
    %134 = vector.broadcast %133 : vector<1x4x1xf32> to vector<2x4x1xf32>
    %135 = arith.addf %131, %134 : vector<2x4x1xf32>
    %136 = vector.broadcast %89 : f32 to vector<2x4x1xf32>
    %137 = arith.mulf %136, %103 : vector<2x4x1xf32>
    %138 = vector.broadcast %90 : f32 to vector<2x1x1xf32>
    %139 = arith.mulf %138, %115 : vector<2x1x1xf32>
    %140 = vector.broadcast %139 : vector<2x1x1xf32> to vector<2x4x1xf32>
    %141 = arith.addf %137, %140 : vector<2x4x1xf32>
    %142 = vector.broadcast %91 : f32 to vector<1x4x1xf32>
    %143 = arith.mulf %142, %125 : vector<1x4x1xf32>
    %144 = vector.broadcast %143 : vector<1x4x1xf32> to vector<2x4x1xf32>
    %145 = arith.addf %141, %144 : vector<2x4x1xf32>
    %cst_60 = arith.constant 0.000000e+00 : f32
    %146 = vector.broadcast %cst_60 : f32 to vector<2x4x1xf32>
    %147 = arith.maximumf %145, %146 : vector<2x4x1xf32>
    %148 = vector.shape_cast %84 : vector<4x1xf32> to vector<1x4x1xf32>
    %cst_61 = arith.constant 9.99999974E-6 : f32
    %149 = vector.broadcast %cst_61 : f32 to vector<2x4x1xf32>
    %150 = arith.addf %147, %149 : vector<2x4x1xf32>
    %151 = math.rsqrt %150 : vector<2x4x1xf32>
    %152 = vector.broadcast %148 : vector<1x4x1xf32> to vector<2x4x1xf32>
    %153 = arith.mulf %152, %151 : vector<2x4x1xf32>
    %154 = vector.shape_cast %85 : vector<4x1xf32> to vector<1x4x1xf32>
    %155 = arith.mulf %135, %153 : vector<2x4x1xf32>
    %156 = vector.broadcast %154 : vector<1x4x1xf32> to vector<2x4x1xf32>
    %157 = arith.subf %156, %155 : vector<2x4x1xf32>
    %158 = vector.broadcast %153 : vector<2x4x1xf32> to vector<2x4x256xf32>
    %159 = arith.mulf %92, %158 : vector<2x4x256xf32>
    %160 = vector.broadcast %157 : vector<2x4x1xf32> to vector<2x4x256xf32>
    %161 = arith.addf %159, %160 : vector<2x4x256xf32>
    %cst_62 = arith.constant 0.000000e+00 : f32
    %162 = vector.broadcast %cst_62 : f32 to vector<2x4x256xf32>
    %163 = arith.maximumf %161, %162 : vector<2x4x256xf32>
    %164 = vector.shape_cast %163 : vector<2x4x256xf32> to vector<8x256xf32>
    %165 = tpu.iota {dimensions = array<i32: 1>} : vector<1x256xi32>
    %c16_i32 = arith.constant 16 : i32
    %c0_i32 = arith.constant 0 : i32
    %166 = arith.cmpi eq, %c16_i32, %c0_i32 : i32
    %c1_i32 = arith.constant 1 : i32
    %167 = arith.select %166, %c1_i32, %c16_i32 : i32
    %168 = vector.broadcast %167 : i32 to vector<1x256xi32>
    %169 = arith.remsi %165, %168 : vector<1x256xi32>
    %c0_i32_63 = arith.constant 0 : i32
    %170 = vector.broadcast %c0_i32_63 : i32 to vector<1x256xi32>
    %171 = arith.cmpi ne, %169, %170 : vector<1x256xi32>
    %c0_i32_64 = arith.constant 0 : i32
    %172 = vector.broadcast %c0_i32_64 : i32 to vector<1x256xi32>
    %173 = arith.cmpi slt, %169, %172 : vector<1x256xi32>
    %c0_i32_65 = arith.constant 0 : i32
    %174 = arith.cmpi slt, %167, %c0_i32_65 : i32
    %175 = vector.broadcast %174 : i1 to vector<1x256xi1>
    %176 = vector.broadcast %175 : vector<1x256xi1> to vector<1x256xi1>
    %177 = arith.xori %173, %176 : vector<1x256xi1>
    %178 = arith.andi %177, %171 : vector<1x256xi1>
    %179 = vector.broadcast %167 : i32 to vector<1x256xi32>
    %180 = arith.addi %169, %179 : vector<1x256xi32>
    %181 = arith.select %178, %180, %169 : vector<1x256xi1>, vector<1x256xi32>
    %c1_i32_66 = arith.constant 1 : i32
    %182 = vector.broadcast %c1_i32_66 : i32 to vector<1x256xi32>
    %183 = arith.cmpi sge, %181, %182 : vector<1x256xi32>
    %cst_67 = arith.constant 0.000000e+00 : f32
    %184 = vector.broadcast %cst_67 : f32 to vector<8x1xf32>
    %185 = vector.extract_strided_slice %164 {offsets = [0, 0], sizes = [8, 255], strides = [1, 1]} : vector<8x256xf32> to vector<8x255xf32>
    %186 = tpu.concatenate %184, %185 in 1 : vector<8x1xf32>, vector<8x255xf32> -> vector<8x256xf32>
    %cst_68 = arith.constant 0.000000e+00 : f32
    %187 = vector.shape_cast %183 : vector<1x256xi1> to vector<1x256xi1>
    %188 = vector.broadcast %187 : vector<1x256xi1> to vector<8x256xi1>
    %189 = vector.broadcast %cst_68 : f32 to vector<8x256xf32>
    %190 = arith.select %188, %186, %189 : vector<8x256xi1>, vector<8x256xf32>
    %c15_i32 = arith.constant 15 : i32
    %191 = vector.broadcast %c15_i32 : i32 to vector<1x256xi32>
    %192 = arith.cmpi slt, %181, %191 : vector<1x256xi32>
    %cst_69 = arith.constant 0.000000e+00 : f32
    %193 = vector.broadcast %cst_69 : f32 to vector<8x1xf32>
    %194 = vector.extract_strided_slice %164 {offsets = [0, 1], sizes = [8, 255], strides = [1, 1]} : vector<8x256xf32> to vector<8x255xf32>
    %195 = tpu.concatenate %194, %193 in 1 : vector<8x255xf32>, vector<8x1xf32> -> vector<8x256xf32>
    %cst_70 = arith.constant 0.000000e+00 : f32
    %196 = vector.shape_cast %192 : vector<1x256xi1> to vector<1x256xi1>
    %197 = vector.broadcast %196 : vector<1x256xi1> to vector<8x256xi1>
    %198 = vector.broadcast %cst_70 : f32 to vector<8x256xf32>
    %199 = arith.select %197, %195, %198 : vector<8x256xi1>, vector<8x256xf32>
    %cst_71 = arith.constant 0.000000e+00 : f32
    %200 = vector.broadcast %cst_71 : f32 to vector<8x16xf32>
    %201 = vector.extract_strided_slice %190 {offsets = [0, 0], sizes = [8, 240], strides = [1, 1]} : vector<8x256xf32> to vector<8x240xf32>
    %202 = tpu.concatenate %200, %201 in 1 : vector<8x16xf32>, vector<8x240xf32> -> vector<8x256xf32>
    %c0_72 = arith.constant 0 : index
    %c0_73 = arith.constant 0 : index
    %203 = vector.load %arg13[%c0_72, %c0_73] : memref<72x256xf32, #tpu.memory_space<vmem>>, vector<8x256xf32>
    tpu.vector_store %arg13[%c0_72, %c0_73], %202 {strides = array<i32>} : memref<72x256xf32, #tpu.memory_space<vmem>>, vector<8x256xf32>,
    %cst_74 = arith.constant 0.000000e+00 : f32
    %204 = vector.broadcast %cst_74 : f32 to vector<8x16xf32>
    %205 = vector.extract_strided_slice %164 {offsets = [0, 0], sizes = [8, 240], strides = [1, 1]} : vector<8x256xf32> to vector<8x240xf32>
    %206 = tpu.concatenate %204, %205 in 1 : vector<8x16xf32>, vector<8x240xf32> -> vector<8x256xf32>
    %c8 = arith.constant 8 : index
    %c0_75 = arith.constant 0 : index
    %207 = vector.load %arg13[%c8, %c0_75] : memref<72x256xf32, #tpu.memory_space<vmem>>, vector<8x256xf32>
    tpu.vector_store %arg13[%c8, %c0_75], %206 {strides = array<i32>} : memref<72x256xf32, #tpu.memory_space<vmem>>, vector<8x256xf32>,
    %cst_76 = arith.constant 0.000000e+00 : f32
    %208 = vector.broadcast %cst_76 : f32 to vector<8x16xf32>
    %209 = vector.extract_strided_slice %199 {offsets = [0, 0], sizes = [8, 240], strides = [1, 1]} : vector<8x256xf32> to vector<8x240xf32>
    %210 = tpu.concatenate %208, %209 in 1 : vector<8x16xf32>, vector<8x240xf32> -> vector<8x256xf32>
    %c16 = arith.constant 16 : index
    %c0_77 = arith.constant 0 : index
    %211 = vector.load %arg13[%c16, %c0_77] : memref<72x256xf32, #tpu.memory_space<vmem>>, vector<8x256xf32>
    tpu.vector_store %arg13[%c16, %c0_77], %210 {strides = array<i32>} : memref<72x256xf32, #tpu.memory_space<vmem>>, vector<8x256xf32>,
    %c24 = arith.constant 24 : index
    %c0_78 = arith.constant 0 : index
    %212 = vector.load %arg13[%c24, %c0_78] : memref<72x256xf32, #tpu.memory_space<vmem>>, vector<8x256xf32>
    tpu.vector_store %arg13[%c24, %c0_78], %190 {strides = array<i32>} : memref<72x256xf32, #tpu.memory_space<vmem>>, vector<8x256xf32>,
    %c32 = arith.constant 32 : index
    %c0_79 = arith.constant 0 : index
    %213 = vector.load %arg13[%c32, %c0_79] : memref<72x256xf32, #tpu.memory_space<vmem>>, vector<8x256xf32>
    tpu.vector_store %arg13[%c32, %c0_79], %164 {strides = array<i32>} : memref<72x256xf32, #tpu.memory_space<vmem>>, vector<8x256xf32>,
    %c40 = arith.constant 40 : index
    %c0_80 = arith.constant 0 : index
    %214 = vector.load %arg13[%c40, %c0_80] : memref<72x256xf32, #tpu.memory_space<vmem>>, vector<8x256xf32>
    tpu.vector_store %arg13[%c40, %c0_80], %199 {strides = array<i32>} : memref<72x256xf32, #tpu.memory_space<vmem>>, vector<8x256xf32>,
    %cst_81 = arith.constant 0.000000e+00 : f32
    %215 = vector.broadcast %cst_81 : f32 to vector<8x16xf32>
    %216 = vector.extract_strided_slice %190 {offsets = [0, 16], sizes = [8, 240], strides = [1, 1]} : vector<8x256xf32> to vector<8x240xf32>
    %217 = tpu.concatenate %216, %215 in 1 : vector<8x240xf32>, vector<8x16xf32> -> vector<8x256xf32>
    %c48 = arith.constant 48 : index
    %c0_82 = arith.constant 0 : index
    %218 = vector.load %arg13[%c48, %c0_82] : memref<72x256xf32, #tpu.memory_space<vmem>>, vector<8x256xf32>
    tpu.vector_store %arg13[%c48, %c0_82], %217 {strides = array<i32>} : memref<72x256xf32, #tpu.memory_space<vmem>>, vector<8x256xf32>,
    %cst_83 = arith.constant 0.000000e+00 : f32
    %219 = vector.broadcast %cst_83 : f32 to vector<8x16xf32>
    %220 = vector.extract_strided_slice %164 {offsets = [0, 16], sizes = [8, 240], strides = [1, 1]} : vector<8x256xf32> to vector<8x240xf32>
    %221 = tpu.concatenate %220, %219 in 1 : vector<8x240xf32>, vector<8x16xf32> -> vector<8x256xf32>
    %c56 = arith.constant 56 : index
    %c0_84 = arith.constant 0 : index
    %222 = vector.load %arg13[%c56, %c0_84] : memref<72x256xf32, #tpu.memory_space<vmem>>, vector<8x256xf32>
    tpu.vector_store %arg13[%c56, %c0_84], %221 {strides = array<i32>} : memref<72x256xf32, #tpu.memory_space<vmem>>, vector<8x256xf32>,
    %cst_85 = arith.constant 0.000000e+00 : f32
    %223 = vector.broadcast %cst_85 : f32 to vector<8x16xf32>
    %224 = vector.extract_strided_slice %199 {offsets = [0, 16], sizes = [8, 240], strides = [1, 1]} : vector<8x256xf32> to vector<8x240xf32>
    %225 = tpu.concatenate %224, %223 in 1 : vector<8x240xf32>, vector<8x16xf32> -> vector<8x256xf32>
    %c64 = arith.constant 64 : index
    %c0_86 = arith.constant 0 : index
    %226 = vector.load %arg13[%c64, %c0_86] : memref<72x256xf32, #tpu.memory_space<vmem>>, vector<8x256xf32>
    tpu.vector_store %arg13[%c64, %c0_86], %225 {strides = array<i32>} : memref<72x256xf32, #tpu.memory_space<vmem>>, vector<8x256xf32>,
    %c0_87 = arith.constant 0 : index
    %c0_88 = arith.constant 0 : index
    %227 = vector.load %arg2[%c0_87, %c0_88] : memref<8x72xf32, #tpu.memory_space<vmem>>, vector<8x72xf32>
    %c0_89 = arith.constant 0 : index
    %c0_90 = arith.constant 0 : index
    %228 = vector.load %arg13[%c0_89, %c0_90] : memref<72x256xf32, #tpu.memory_space<vmem>>, vector<72x256xf32>
    %cst_91 = arith.constant dense<0.000000e+00> : vector<8x256xf32>
    %229 = tpu.matmul %227, %228, %cst_91 {dimension_numbers = #tpu.dot_dimension_numbers<[1], [0], [0], [1], [0, 0, 1, 1], [], []>} : vector<8x72xf32>, vector<72x256xf32>, vector<8x256xf32> -> vector<8x256xf32>
    %c0_92 = arith.constant 0 : index
    %c0_93 = arith.constant 0 : index
    %230 = vector.load %arg8[%c0_92, %c0_93] : memref<4x1xf32, #tpu.memory_space<vmem>>, vector<4x1xf32>
    %c0_94 = arith.constant 0 : index
    %c0_95 = arith.constant 0 : index
    %231 = vector.load %arg9[%c0_94, %c0_95] : memref<4x1xf32, #tpu.memory_space<vmem>>, vector<4x1xf32>
    %c2_96 = arith.constant 2 : index
    %c0_97 = arith.constant 0 : index
    %232 = memref.load %arg10[%c2_96, %c0_97] : memref<3x3xf32, #tpu.memory_space<smem>>
    %c2_98 = arith.constant 2 : index
    %c1_99 = arith.constant 1 : index
    %233 = memref.load %arg10[%c2_98, %c1_99] : memref<3x3xf32, #tpu.memory_space<smem>>
    %c2_100 = arith.constant 2 : index
    %c2_101 = arith.constant 2 : index
    %234 = memref.load %arg10[%c2_100, %c2_101] : memref<3x3xf32, #tpu.memory_space<smem>>
    %c2_102 = arith.constant 2 : index
    %c0_103 = arith.constant 0 : index
    %235 = memref.load %arg11[%c2_102, %c0_103] : memref<3x3xf32, #tpu.memory_space<smem>>
    %c2_104 = arith.constant 2 : index
    %c1_105 = arith.constant 1 : index
    %236 = memref.load %arg11[%c2_104, %c1_105] : memref<3x3xf32, #tpu.memory_space<smem>>
    %c2_106 = arith.constant 2 : index
    %c2_107 = arith.constant 2 : index
    %237 = memref.load %arg11[%c2_106, %c2_107] : memref<3x3xf32, #tpu.memory_space<smem>>
    %238 = vector.shape_cast %229 : vector<8x256xf32> to vector<2x4x256xf32>
    %cst_108 = arith.constant dense<0.000000e+00> : vector<2x4xf32>
    %239 = vector.multi_reduction <add>, %238, %cst_108 [2] : vector<2x4x256xf32> to vector<2x4xf32>
    %240 = vector.shape_cast %239 : vector<2x4xf32> to vector<2x4x1xf32>
    %cst_109 = arith.constant 2.560000e+02 : f32
    %241 = vector.broadcast %cst_109 : f32 to vector<2x4x1xf32>
    %242 = arith.divf %240, %241 : vector<2x4x1xf32>
    %243 = vector.broadcast %242 : vector<2x4x1xf32> to vector<2x4x256xf32>
    %244 = arith.subf %238, %243 : vector<2x4x256xf32>
    %245 = arith.mulf %244, %244 : vector<2x4x256xf32>
    %cst_110 = arith.constant dense<0.000000e+00> : vector<2x4xf32>
    %246 = vector.multi_reduction <add>, %245, %cst_110 [2] : vector<2x4x256xf32> to vector<2x4xf32>
    %247 = vector.shape_cast %246 : vector<2x4xf32> to vector<2x4x1xf32>
    %cst_111 = arith.constant 0.00392156886 : f32
    %248 = vector.broadcast %cst_111 : f32 to vector<2x4x1xf32>
    %249 = arith.mulf %247, %248 : vector<2x4x1xf32>
    %250 = arith.mulf %242, %242 : vector<2x4x1xf32>
    %251 = arith.addf %249, %250 : vector<2x4x1xf32>
    %cst_112 = arith.constant dense<0.000000e+00> : vector<2x1xf32>
    %252 = vector.multi_reduction <add>, %242, %cst_112 [1] : vector<2x4x1xf32> to vector<2x1xf32>
    %253 = vector.shape_cast %252 : vector<2x1xf32> to vector<2x1x1xf32>
    %cst_113 = arith.constant 4.000000e+00 : f32
    %254 = vector.broadcast %cst_113 : f32 to vector<2x1x1xf32>
    %255 = arith.divf %253, %254 : vector<2x1x1xf32>
    %cst_114 = arith.constant dense<0.000000e+00> : vector<2x1xf32>
    %256 = vector.multi_reduction <add>, %251, %cst_114 [1] : vector<2x4x1xf32> to vector<2x1xf32>
    %257 = vector.shape_cast %256 : vector<2x1xf32> to vector<2x1x1xf32>
    %cst_115 = arith.constant 4.000000e+00 : f32
    %258 = vector.broadcast %cst_115 : f32 to vector<2x1x1xf32>
    %259 = arith.divf %257, %258 : vector<2x1x1xf32>
    %260 = arith.mulf %255, %255 : vector<2x1x1xf32>
    %261 = arith.subf %259, %260 : vector<2x1x1xf32>
    %cst_116 = arith.constant dense<0.000000e+00> : vector<4x1xf32>
    %262 = vector.multi_reduction <add>, %242, %cst_116 [0] : vector<2x4x1xf32> to vector<4x1xf32>
    %263 = vector.shape_cast %262 : vector<4x1xf32> to vector<1x4x1xf32>
    %cst_117 = arith.constant 2.000000e+00 : f32
    %264 = vector.broadcast %cst_117 : f32 to vector<1x4x1xf32>
    %265 = arith.divf %263, %264 : vector<1x4x1xf32>
    %cst_118 = arith.constant dense<0.000000e+00> : vector<4x1xf32>
    %266 = vector.multi_reduction <add>, %251, %cst_118 [0] : vector<2x4x1xf32> to vector<4x1xf32>
    %267 = vector.shape_cast %266 : vector<4x1xf32> to vector<1x4x1xf32>
    %cst_119 = arith.constant 2.000000e+00 : f32
    %268 = vector.broadcast %cst_119 : f32 to vector<1x4x1xf32>
    %269 = arith.divf %267, %268 : vector<1x4x1xf32>
    %270 = arith.mulf %265, %265 : vector<1x4x1xf32>
    %271 = arith.subf %269, %270 : vector<1x4x1xf32>
    %272 = vector.broadcast %232 : f32 to vector<2x4x1xf32>
    %273 = arith.mulf %272, %242 : vector<2x4x1xf32>
    %274 = vector.broadcast %233 : f32 to vector<2x1x1xf32>
    %275 = arith.mulf %274, %255 : vector<2x1x1xf32>
    %276 = vector.broadcast %275 : vector<2x1x1xf32> to vector<2x4x1xf32>
    %277 = arith.addf %273, %276 : vector<2x4x1xf32>
    %278 = vector.broadcast %234 : f32 to vector<1x4x1xf32>
    %279 = arith.mulf %278, %265 : vector<1x4x1xf32>
    %280 = vector.broadcast %279 : vector<1x4x1xf32> to vector<2x4x1xf32>
    %281 = arith.addf %277, %280 : vector<2x4x1xf32>
    %282 = vector.broadcast %235 : f32 to vector<2x4x1xf32>
    %283 = arith.mulf %282, %249 : vector<2x4x1xf32>
    %284 = vector.broadcast %236 : f32 to vector<2x1x1xf32>
    %285 = arith.mulf %284, %261 : vector<2x1x1xf32>
    %286 = vector.broadcast %285 : vector<2x1x1xf32> to vector<2x4x1xf32>
    %287 = arith.addf %283, %286 : vector<2x4x1xf32>
    %288 = vector.broadcast %237 : f32 to vector<1x4x1xf32>
    %289 = arith.mulf %288, %271 : vector<1x4x1xf32>
    %290 = vector.broadcast %289 : vector<1x4x1xf32> to vector<2x4x1xf32>
    %291 = arith.addf %287, %290 : vector<2x4x1xf32>
    %cst_120 = arith.constant 0.000000e+00 : f32
    %292 = vector.broadcast %cst_120 : f32 to vector<2x4x1xf32>
    %293 = arith.maximumf %291, %292 : vector<2x4x1xf32>
    %294 = vector.shape_cast %230 : vector<4x1xf32> to vector<1x4x1xf32>
    %cst_121 = arith.constant 9.99999974E-6 : f32
    %295 = vector.broadcast %cst_121 : f32 to vector<2x4x1xf32>
    %296 = arith.addf %293, %295 : vector<2x4x1xf32>
    %297 = math.rsqrt %296 : vector<2x4x1xf32>
    %298 = vector.broadcast %294 : vector<1x4x1xf32> to vector<2x4x1xf32>
    %299 = arith.mulf %298, %297 : vector<2x4x1xf32>
    %300 = vector.shape_cast %231 : vector<4x1xf32> to vector<1x4x1xf32>
    %301 = arith.mulf %281, %299 : vector<2x4x1xf32>
    %302 = vector.broadcast %300 : vector<1x4x1xf32> to vector<2x4x1xf32>
    %303 = arith.subf %302, %301 : vector<2x4x1xf32>
    %304 = vector.broadcast %299 : vector<2x4x1xf32> to vector<2x4x256xf32>
    %305 = arith.mulf %238, %304 : vector<2x4x256xf32>
    %306 = vector.broadcast %303 : vector<2x4x1xf32> to vector<2x4x256xf32>
    %307 = arith.addf %305, %306 : vector<2x4x256xf32>
    %cst_122 = arith.constant 0.000000e+00 : f32
    %308 = vector.broadcast %cst_122 : f32 to vector<2x4x256xf32>
    %309 = arith.maximumf %307, %308 : vector<2x4x256xf32>
    %310 = vector.shape_cast %309 : vector<2x4x256xf32> to vector<8x256xf32>
    %c0_123 = arith.constant 0 : index
    %c0_124 = arith.constant 0 : index
    %311 = vector.load %arg3[%c0_123, %c0_124] : memref<32x8xf32, #tpu.memory_space<vmem>>, vector<32x8xf32>
    %cst_125 = arith.constant dense<0.000000e+00> : vector<32x256xf32>
    %312 = tpu.matmul %311, %310, %cst_125 {dimension_numbers = #tpu.dot_dimension_numbers<[1], [0], [0], [1], [0, 0, 1, 1], [], []>} : vector<32x8xf32>, vector<8x256xf32>, vector<32x256xf32> -> vector<32x256xf32>
    %313 = arith.addf %312, %0 : vector<32x256xf32>
    %c0_126 = arith.constant 0 : index
    %c0_127 = arith.constant 0 : index
    %314 = vector.load %arg12[%c0_126, %c0_127] : memref<32x256xf32, #tpu.memory_space<vmem>>, vector<32x256xf32>
    tpu.vector_store %arg12[%c0_126, %c0_127], %313 {strides = array<i32>} : memref<32x256xf32, #tpu.memory_space<vmem>>, vector<32x256xf32>,
    return
  }
}

</mosaic_0001>

<bundles_post_ra>
// kernel: tpu_custom_call.1
= control target key start
LH: loop header
LB: loop body
LE: loop exit
PB: predicated region body
PF: predicated region fallthrough
CT: control target
= control target key end

     0   :  { %17 = vsyncpa [#allocation5], 0  ;;  %s1793_s0 = inlined_call_operand.vmem [shape: f32[32,256], index: 0, kind: input, shape index: {}]   ;;  %s1794_s1 = inlined_call_operand.vmem [shape: f32[8,32], index: 1, kind: input, shape index: {}]   ;;  %s1795_s2 = inlined_call_operand.vmem [shape: f32[8,72], index: 2, kind: input, shape index: {}]   ;;  %s1796_s3 = inlined_call_operand.vmem [shape: f32[32,8], index: 3, kind: input, shape index: {}]   ;;  %s1797_s4 = inlined_call_operand.vmem [shape: f32[16,1], index: 4, kind: input, shape index: {}]   ;;  %s1798_s5 = inlined_call_operand.vmem [shape: f32[16,1], index: 5, kind: input, shape index: {}]   ;;  %s1799_s6 = inlined_call_operand.vmem [shape: f32[4,1], index: 6, kind: input, shape index: {}]   ;;  %s1800_s7 = inlined_call_operand.vmem [shape: f32[4,1], index: 7, kind: input, shape index: {}]   ;;  %s1801_s8 = inlined_call_operand.vmem [shape: f32[4,1], index: 8, kind: input, shape index: {}]   ;;  %s1802_s9 = inlined_call_operand.vmem [shape: f32[4,1], index: 9, kind: input, shape index: {}]   ;;  %s1803_s10 = inlined_call_operand.vmem [shape: f32[3,3], index: 10, kind: input, shape index: {}]   ;;  %s1804_s11 = inlined_call_operand.vmem [shape: f32[3,3], index: 11, kind: input, shape index: {}]   ;;  %s1805_s12 = inlined_call_operand.hbm [shape: f32[32,256], index: 12, kind: output, shape index: {}]  }
   0x1   :  { %18 = vsyncpa [#allocation7], 0 }
   0x2   :  { %19 = vsyncpa [#allocation4], 0  ;;  %s46_s23 = sshll.u32 %s1803_s10, 4  ;;  %s56_s26 = sshll.u32 %s1804_s11, 4  ;;  %s47_s23 = int_to_ptr.vmem [resolvable:$true] %s46_s23  ;;  %s57_s26 = int_to_ptr.vmem [resolvable:$true] %s56_s26 }
   0x3   :  { %s1316_s27 = scalar_lea.vmem %s47_s23, 64  ;;  %p1321_p1 = scmp.lt.s32.totalorder %s47_s23, %s47_s23 }
   0x4   :  { %p1317_p0 = scmp.ne.s32.totalorder %s47_s23, %s1316_s27  ;;  %p1322_p2 = scmp.lt.s32.totalorder %s1316_s27, %s1316_s27 }
   0x6   :  { %p1323_p3 = por %p1322_p2, %p1321_p1 }
   0x8   :  { %p1324_p4 = pnand %p1323_p3, %p1317_p0 }
   0xa   :  { %1327 = shalt.err (!%p1324_p4)
}
   0xb   :  { %s1368_s28 = smov [#allocation3]   ;;  %s1328_s29 = scalar_lea.vmem %s57_s26, 64 }
   0xc   :  { %49 = dma.vmem_to_smem %s47_s23, 64, %s1368_s28, [#allocation5]  }
   0xd   :  { %p1329_p5 = scmp.ne.s32.totalorder %s57_s26, %s1328_s29  ;;  %p1333_p6 = scmp.lt.s32.totalorder %s57_s26, %s57_s26 }
   0xe   :  { %p1334_p7 = scmp.lt.s32.totalorder %s1328_s29, %s1328_s29 }
  0x10   :  { %p1335_p8 = por %p1334_p7, %p1333_p6 }
  0x12   :  { %p1336_p9 = pnand %p1335_p8, %p1329_p5 }
  0x14   :  { %1339 = shalt.err (!%p1336_p9)
}
  0x15   :  { %s1369_s10 = smov [#allocation6]  }
  0x16   :  { %59 = dma.vmem_to_smem %s57_s26, 64, %s1369_s10, [#allocation7]  }
  0x17   :  { %1362 = dma.done.wait [#allocation5], 64  }
  0x18   :  { %1363 = vsyncadd [#allocation5], 4294967232 }
  0x19   :  { %1364 = dma.done.wait [#allocation7], 64  }
  0x1a   :  { %1365 = vsyncadd [#allocation7], 4294967232 }
  0x1b   :  { %66 = sfence }
  0x1c   :  { %v1454_v0 = vld [vmem:[%s1793_s0 + $0x20] sm:$0xff]  ;;  %v1459_v1 = vld [vmem:[%s1793_s0 + $0x28] sm:$0xff]  ;;  %v1476_v5 = vld [vmem:[%s1793_s0 + $0x30] sm:$0xff]  ;;  %s79_s27 = sld [smem:[#allocation3]]  ;;  %s1179_s28 = sld [smem:[#allocation3 + $0x1]]  ;;  %vm319_vm0 = vcmask 261120  }
  0x1d   :  { %v1464_v2 = vld [vmem:[%s1793_s0] sm:$0xff]  ;;  %v91_v3 = vadd.f32 %v1459_v1, %v1454_v0  ;;  %v1471_v4 = vld [vmem:[%s1793_s0 + $0x8] sm:$0xff]  ;;  %v1481_v6 = vld [vmem:[%s1793_s0 + $0x38] sm:$0xff]  ;;  %s1180_s29 = sld [smem:[#allocation3 + $0x2]]  ;;  %s82_s10 = sld [smem:[#allocation6]]  ;;  %vm412_vm1 = vcmask 1043456  }
  0x1e   :  { %v85_v7 = vadd.f32 %v1471_v4, %v1464_v2  ;;  %v1488_v8 = vld [vmem:[%s1793_s0 + $0x10] sm:$0xff]  ;;  %v1493_v9 = vld [vmem:[%s1793_s0 + $0x18] sm:$0xff]  ;;  %v94_v10 = vadd.f32 %v1481_v6, %v1476_v5  ;;  %s1181_s11 = sld [smem:[#allocation6 + $0x1]]  ;;  %s1182_s30 = sld [smem:[#allocation6 + $0x2]]  ;;  %vm639_vm2 = vcmask 7168   ;;  %vm656_vm5 = vcmask 1039360  }
  0x1f   :  { %92 = vadd.xlane.f32.xlu1 %v91_v3  ;;  %v88_v11 = vadd.f32 %v1493_v9, %v1488_v8  ;;  %s1612_s21 = sld [smem:[#allocation3 + $0x81]]  ;;  %s1186_s22 = sld [smem:[#allocation3 + $0x82]]  ;;  %vm673_vm8 = vcmask 130048   ;;  %vm1377_vm11 = vmmov 1  }
  0x20   :  { %86 = vadd.xlane.f32.xlu0 %v85_v7  ;;  %s1187_s23 = sld [smem:[#allocation6 + $0x80]]  ;;  %s1188_s24 = sld [smem:[#allocation6 + $0x81]]  ;;  %vm1673_vm9 = vmneg %vm673_vm8 }
  0x21   :  { %s1189_s25 = sld [smem:[#allocation6 + $0x82]]  ;;  %vm1229_vm10 = vmpackc.low %vm1673_vm9, %vm1673_vm9  ;;  %s1716_s14 = sld [smem:[#allocation3 + $0x101]] }
  0x22   :  { %v192_v56 = vstv %s79_s27  ;;  %v197_v57 = vstv %s1179_s28  ;;  %s1195_s15 = sld [smem:[#allocation3 + $0x102]]  ;;  %s1196_s16 = sld [smem:[#allocation6 + $0x100]] }
  0x23   :  { %95 = vadd.xlane.f32.xlu1 %v94_v10  ;;  %v204_v62 = vstv %s1180_s29  ;;  %s1198_s17 = sld [smem:[#allocation6 + $0x102]] }
  0x24   :  { %89 = vadd.xlane.f32.xlu0 %v88_v11 }
  0xac   :  { %v93_v12 = vpop.xlane.xlu1 %92 }
  0xad   :  { %v1499_v13 = vmul.f32 0.00390625, %v93_v12  ;;  %v87_v14 = vpop.xlane.xlu0 %86 }
  0xae   :  { %v1501_v15 = vmul.f32 0.00390625, %v87_v14 }
  0xaf   :  { %v106_v16 = vsub.f32 %v1454_v0, %v1499_v13  ;;  %v107_v17 = vsub.f32 %v1459_v1, %v1499_v13  ;;  %v195_v10 = vmul.f32 %v192_v56, %v1499_v13 }
  0xb0   :  { %v96_v18 = vpop.xlane.xlu1 %95  ;;  %v102_v19 = vsub.f32 %v1464_v2, %v1501_v15  ;;  %v103_v20 = vsub.f32 %v1471_v4, %v1501_v15  ;;  %v179_v21 = vadd.f32 %v1499_v13, %v1501_v15  ;;  %v193_v63 = vmul.f32 %v192_v56, %v1501_v15 }
  0xb1   :  { %v1513_v22 = vmul.f32 0.00390625, %v96_v18  ;;  %v90_v23 = vpop.xlane.xlu0 %89  ;;  %v114_v24 = vmul.f32 %v106_v16, %v106_v16  ;;  %v115_v25 = vmul.f32 %v107_v17, %v107_v17 }
  0xb2   :  { %v1515_v26 = vmul.f32 0.00390625, %v90_v23  ;;  %v110_v27 = vmul.f32 %v102_v19, %v102_v19  ;;  %v111_v28 = vmul.f32 %v103_v20, %v103_v20  ;;  %v182_v59 = vmul.f32 0.5, %v179_v21 }
  0xb3   :  { %v149_v29 = vadd.f32 %v1513_v22, %v1499_v13  ;;  %v108_v30 = vsub.f32 %v1476_v5, %v1513_v22  ;;  %v109_v31 = vsub.f32 %v1481_v6, %v1513_v22  ;;  %v124_v36 = vadd.f32 %v115_v25, %v114_v24 }
  0xb4   :  { %v142_v32 = vadd.f32 %v1515_v26, %v1501_v15  ;;  %v118_v33 = vadd.f32 %v111_v28, %v110_v27  ;;  %v104_v34 = vsub.f32 %v1488_v8, %v1515_v26  ;;  %v105_v35 = vsub.f32 %v1493_v9, %v1515_v26 }
  0xb5   :  { %v116_v37 = vmul.f32 %v108_v30, %v108_v30  ;;  %v117_v40 = vmul.f32 %v109_v31, %v109_v31  ;;  %v150_v42 = vrot.slane %v149_v29, 4  ;;  %v180_v43 = vadd.f32 %v1513_v22, %v1515_v26 }
  0xb6   :  { %119 = vadd.xlane.f32.xlu0 %v118_v33  ;;  %v112_v38 = vmul.f32 %v104_v34, %v104_v34  ;;  %v113_v39 = vmul.f32 %v105_v35, %v105_v35  ;;  %v143_v41 = vrot.slane %v142_v32, 4  ;;  %v194_v7 = vmul.f32 %v192_v56, %v1515_v26 }
  0xb7   :  { %v151_v46 = vadd.f32 %v150_v42, %v149_v29  ;;  %v127_v47 = vadd.f32 %v117_v40, %v116_v37  ;;  %v183_v60 = vmul.f32 0.5, %v180_v43  ;;  %v196_v12 = vmul.f32 %v192_v56, %v1513_v22 }
  0xb8   :  { %v121_v44 = vadd.f32 %v113_v39, %v112_v38  ;;  %v144_v45 = vadd.f32 %v143_v41, %v142_v32  ;;  %v205_v16 = vmul.f32 %v204_v62, %v182_v59  ;;  %v1370_v27 = vmov 0  }
  0xb9   :  { %v152_v49 = vrot.slane %v151_v46, 2  ;;  %v206_v18 = vmul.f32 %v204_v62, %v183_v60  ;;  %1261 = vset.pattern.permute.xlu1 %v1370_v27  ;;  %1260 = vset.pattern.permute.xlu0 %v1370_v27  ;;  %v136_v31 = vmul.f32 %v1499_v13, %v1499_v13  ;;  %v134_v33 = vmul.f32 %v1501_v15, %v1501_v15 }
  0xba   :  { %125 = vadd.xlane.f32.xlu0 %v124_v36  ;;  %122 = vadd.xlane.f32.xlu1 %v121_v44  ;;  %v145_v48 = vrot.slane %v144_v45, 2  ;;  %v135_v34 = vmul.f32 %v1515_v26, %v1515_v26  ;;  %v137_v43 = vmul.f32 %v1513_v22, %v1513_v22 }
  0xbb   :  { %v153_v51 = vadd.f32 %v152_v49, %v151_v46 }
  0xbc   :  { %v146_v50 = vadd.f32 %v145_v48, %v144_v45  ;;  %v188_v45 = vmul.f32 %v182_v59, %v182_v59 }
  0xbd   :  { %v154_v53 = vrot.slane %v153_v51, 1 }
  0xbe   :  { %128 = vadd.xlane.f32.xlu1 %v127_v47  ;;  %v147_v52 = vrot.slane %v146_v50, 1 }
  0xbf   :  { %v155_v55 = vadd.f32 %v154_v53, %v153_v51  ;;  %v189_v51 = vmul.f32 %v183_v60, %v183_v60 }
  0xc0   :  { %v148_v54 = vadd.f32 %v147_v52, %v146_v50 }
  0xc1   :  { %v1533_v61 = vmul.f32 0.0625, %v155_v55 }
  0xc2   :  { %v1531_v58 = vmul.f32 0.0625, %v148_v54 }
  0xc3   :  { %v199_v11 = vmul.f32 %v197_v57, %v1533_v61 }
  0xc4   :  { %v198_v3 = vmul.f32 %v197_v57, %v1531_v58 }
  0xc5   :  { %v202_v19 = vadd.f32 %v199_v11, %v195_v10  ;;  %v203_v20 = vadd.f32 %v199_v11, %v196_v12  ;;  %v211_v10 = vstv %s82_s10  ;;  %v216_v11 = vstv %s1181_s11  ;;  %s1375_s10 = smov 16   ;;  %s1376_s11 = smov 112  }
  0xc6   :  { %v200_v14 = vadd.f32 %v198_v3, %v193_v63  ;;  %v201_v17 = vadd.f32 %v198_v3, %v194_v7  ;;  %v175_v63 = vmul.f32 %v1531_v58, %v1531_v58  ;;  %v223_v12 = vstv %s1182_s30 }
  0xc7   :  { %v1545_v24 = vadd.f32 %v205_v16, %v202_v19  ;;  %v1547_v25 = vadd.f32 %v206_v18, %v203_v20 }
  0xc8   :  { %v1541_v21 = vadd.f32 %v205_v16, %v200_v14  ;;  %v1543_v23 = vadd.f32 %v206_v18, %v201_v17  ;;  %v176_v16 = vmul.f32 %v1533_v61, %v1533_v61 }
 0x143   :  { %v120_v28 = vpop.xlane.xlu0 %119 }
 0x144   :  { %v130_v29 = vmul.f32 0.003921569, %v120_v28 }
 0x146   :  { %v138_v37 = vadd.f32 %v134_v33, %v130_v29  ;;  %v212_v17 = vmul.f32 %v211_v10, %v130_v29 }
 0x147   :  { %v123_v30 = vpop.xlane.xlu1 %122  ;;  %v126_v32 = vpop.xlane.xlu0 %125 }
 0x148   :  { %v131_v35 = vmul.f32 0.003921569, %v123_v30  ;;  %v132_v36 = vmul.f32 0.003921569, %v126_v32 }
 0x14a   :  { %v139_v38 = vadd.f32 %v135_v34, %v131_v35  ;;  %v140_v39 = vadd.f32 %v136_v31, %v132_v36  ;;  %v213_v18 = vmul.f32 %v211_v10, %v131_v35  ;;  %v214_v58 = vmul.f32 %v211_v10, %v132_v36  ;;  %v75_v36 = vld [vmem:[%s1797_s4] sm:$0xff] }
 0x14b   :  { %v129_v40 = vpop.xlane.xlu1 %128 }
 0x14c   :  { %v159_v41 = vadd.f32 %v139_v38, %v138_v37  ;;  %v184_v42 = vadd.f32 %v140_v39, %v138_v37  ;;  %v133_v44 = vmul.f32 0.003921569, %v129_v40 }
 0x14e   :  { %v160_v13 = vrot.slane %v159_v41, 4  ;;  %v186_v46 = vmul.f32 0.5, %v184_v42  ;;  %v141_v47 = vadd.f32 %v137_v43, %v133_v44  ;;  %v215_v34 = vmul.f32 %v211_v10, %v133_v44  ;;  %v76_v44 = vld [vmem:[%s1797_s4 + $0x8] sm:$0xff]  ;;  %s1197_s4 = sld [smem:[#allocation6 + $0x101]] }
 0x150   :  { %v161_v15 = vadd.f32 %v160_v13, %v159_v41  ;;  %v190_v48 = vsub.f32 %v186_v46, %v188_v45  ;;  %v166_v49 = vadd.f32 %v141_v47, %v140_v39  ;;  %v185_v26 = vadd.f32 %v141_v47, %v139_v38 }
 0x152   :  { %v162_v50 = vrot.slane %v161_v15, 2  ;;  %v167_v52 = vrot.slane %v166_v49, 4  ;;  %v187_v53 = vmul.f32 0.5, %v185_v26  ;;  %v224_v27 = vmul.f32 %v223_v12, %v190_v48 }
 0x154   :  { %v163_v54 = vadd.f32 %v162_v50, %v161_v15  ;;  %v168_v55 = vadd.f32 %v167_v52, %v166_v49  ;;  %v191_v56 = vsub.f32 %v187_v53, %v189_v51 }
 0x156   :  { %v164_v22 = vrot.slane %v163_v54, 1  ;;  %v169_v57 = vrot.slane %v168_v55, 2  ;;  %v225_v32 = vmul.f32 %v223_v12, %v191_v56 }
 0x158   :  { %v165_v62 = vadd.f32 %v164_v22, %v163_v54  ;;  %v170_v59 = vadd.f32 %v169_v57, %v168_v55  ;;  %v77_v57 = vld [vmem:[%s1798_s5] sm:$0xff] }
 0x15a   :  { %v173_v3 = vmul.f32 0.0625, %v165_v62  ;;  %v171_v7 = vrot.slane %v170_v59, 1 }
 0x15c   :  { %v177_v60 = vsub.f32 %v173_v3, %v175_v63  ;;  %v172_v14 = vadd.f32 %v171_v7, %v170_v59 }
 0x15e   :  { %v217_v19 = vmul.f32 %v216_v11, %v177_v60  ;;  %v174_v20 = vmul.f32 0.0625, %v172_v14 }
 0x160   :  { %v219_v28 = vadd.f32 %v217_v19, %v212_v17  ;;  %v220_v30 = vadd.f32 %v217_v19, %v213_v18  ;;  %v178_v31 = vsub.f32 %v174_v20, %v176_v16 }
 0x162   :  { %v226_v33 = vadd.f32 %v224_v27, %v219_v28  ;;  %v218_v37 = vmul.f32 %v216_v11, %v178_v31  ;;  %v227_v38 = vadd.f32 %v225_v32, %v220_v30 }
 0x164   :  { %v230_v39 = vmax.f32 %v226_v33, 0.0  ;;  %v221_v40 = vadd.f32 %v218_v37, %v214_v58  ;;  %v222_v41 = vadd.f32 %v218_v37, %v215_v34  ;;  %v231_v42 = vmax.f32 %v227_v38, 0.0 }
 0x166   :  { %v234_v43 = vadd.f32 1e-05, %v230_v39  ;;  %v228_v61 = vadd.f32 %v224_v27, %v221_v40  ;;  %v229_v29 = vadd.f32 %v225_v32, %v222_v41  ;;  %v235_v35 = vadd.f32 1e-05, %v231_v42 }
 0x168   :  { %1292 = vrsqrt.f32 %v234_v43  ;;  %v232_v13 = vmax.f32 %v228_v61, 0.0  ;;  %v233_v45 = vmax.f32 %v229_v29, 0.0 }
 0x169   :  { %1294 = vrsqrt.f32 %v235_v35 }
 0x16a   :  { %v236_v46 = vadd.f32 1e-05, %v232_v13  ;;  %v237_v47 = vadd.f32 1e-05, %v233_v45 }
 0x16c   :  { %1296 = vrsqrt.f32 %v236_v46 }
 0x16d   :  { %1298 = vrsqrt.f32 %v237_v47 }
 0x172   :  { %v1293_v15 = vpop.eup %1292 }
 0x173   :  { %v1295_v48 = vpop.eup %1294  ;;  %v242_v49 = vmul.f32 %v1293_v15, %v75_v36 }
 0x174   :  { %v243_v26 = vmul.f32 %v1295_v48, %v76_v44 }
 0x175   :  { %256 = vperm.xlu0 %1260, %v242_v49   ;;  %v246_v50 = vmul.f32 %v242_v49, %v1541_v21  ;;  %v78_v21 = vld [vmem:[%s1798_s5 + $0x8] sm:$0xff] }
 0x176   :  { %v1297_v51 = vpop.eup %1296  ;;  %261 = vperm.xlu1 %1261, %v243_v26   ;;  %v247_v52 = vmul.f32 %v243_v26, %v1543_v23 }
 0x177   :  { %v1299_v53 = vpop.eup %1298  ;;  %v244_v54 = vmul.f32 %v1297_v51, %v75_v36  ;;  %v250_v62 = vsub.f32 %v77_v57, %v246_v50  ;;  %v1372_v50 = vmov 839922192  }
 0x178   :  { %v245_v55 = vmul.f32 %v1299_v53, %v76_v44  ;;  %v251_v23 = vsub.f32 %v78_v21, %v247_v52  ;;  %v428_v51 = vunpack.c.l.s4 %v1372_v50  ;;  %v430_v52 = vlaneseq }
 0x179   :  { %v248_v56 = vmul.f32 %v244_v54, %v1545_v24  ;;  %v1371_v24 = vmov 0.0  }
 0x17a   :  { %266 = vperm.xlu1 %1261, %v244_v54   ;;  %v249_v22 = vmul.f32 %v245_v55, %v1547_v25  ;;  %387 = vmatprep.mubr.f32.mxu0 %v1371_v24  ;;  %v429_v53 = vunpack.c.0.s8 %v428_v51  ;;  %v431_v54 = vshrl.u32 %v430_v52, 7 }
 0x17b   :  { %v252_v59 = vsub.f32 %v77_v57, %v248_v56  ;;  %828 = vmatprep.mubr.f32.mxu1 %v1371_v24 }
 0x17c   :  { %v253_v63 = vsub.f32 %v78_v21, %v249_v22  ;;  %v1602_v22 = vsub.s32 %v429_v53, %v431_v54 }
 0x17e   :  { %271 = vperm.xlu1 %1261, %v245_v55  }
 0x182   :  { %284 = vperm.xlu1 %1261, %v250_v62  }
 0x186   :  { %289 = vperm.xlu1 %1261, %v251_v23  }
 0x18a   :  { %294 = vperm.xlu1 %1261, %v252_v59  }
 0x18e   :  { %299 = vperm.xlu1 %1261, %v253_v63  }
 0x1f4   :  { %v257_v10 = vpop.permute.xlu0 %256 }
 0x1f5   :  { %v262_v25 = vpop.permute.xlu1 %261  ;;  %v274_v60 = vmul.f32 %v257_v10, %v1464_v2  ;;  %v275_v12 = vmul.f32 %v257_v10, %v1471_v4 }
 0x1f6   :  { %v276_v14 = vmul.f32 %v262_v25, %v1488_v8  ;;  %v277_v16 = vmul.f32 %v262_v25, %v1493_v9 }
 0x1f9   :  { %v267_v3 = vpop.permute.xlu1 %266 }
 0x1fa   :  { %v278_v33 = vmul.f32 %v267_v3, %v1454_v0  ;;  %v279_v2 = vmul.f32 %v267_v3, %v1459_v1  ;;  %v318_v1 = vld [vmem:[%s1794_s1] sm:$0xff]  ;;  %s1609_s1 = sld [smem:[#allocation3 + $0x80]] }
 0x1fd   :  { %v272_v7 = vpop.permute.xlu1 %271 }
 0x1fe   :  { %v280_v8 = vmul.f32 %v272_v7, %v1476_v5  ;;  %v281_v9 = vmul.f32 %v272_v7, %v1481_v6 }
 0x201   :  { %v285_v11 = vpop.permute.xlu1 %284 }
 0x202   :  { %v302_v17 = vadd.f32 %v285_v11, %v274_v60  ;;  %v303_v18 = vadd.f32 %v285_v11, %v275_v12 }
 0x204   :  { %v310_v28 = vmax.f32 %v302_v17, 0.0  ;;  %v311_v31 = vmax.f32 %v303_v18, 0.0 }
 0x205   :  { %v290_v19 = vpop.permute.xlu1 %289 }
 0x206   :  { %v304_v20 = vadd.f32 %v290_v19, %v276_v14  ;;  %v305_v27 = vadd.f32 %v290_v19, %v277_v16 }
 0x208   :  { %v312_v30 = vmax.f32 %v304_v20, 0.0  ;;  %v313_v32 = vmax.f32 %v305_v27, 0.0 }
 0x209   :  { %v295_v58 = vpop.permute.xlu1 %294 }
 0x20a   :  { %v1218_v34 = vpack.c.bf16 %v313_v32, %v311_v31  ;;  %v1220_v4 = vpack.c.bf16 %v312_v30, %v310_v28  ;;  %v306_v37 = vadd.f32 %v295_v58, %v278_v33  ;;  %v307_v38 = vadd.f32 %v295_v58, %v279_v2 }
 0x20c   :  { %1219 = vmatprep.subr.bf16.mxu0 %v1218_v34  ;;  %v314_v42 = vmax.f32 %v306_v37, 0.0  ;;  %v315_v43 = vmax.f32 %v307_v38, 0.0  ;;  %v512_v37 = vstv %s1609_s1  ;;  %v515_v38 = vstv %s1612_s21 }
 0x20d   :  { %1221 = vmatpush1.bf16.msra.mxu0 %v1220_v4  ;;  %v300_v39 = vpop.permute.xlu1 %299 }
 0x20e   :  { %v308_v40 = vadd.f32 %v300_v39, %v280_v8  ;;  %v309_v41 = vadd.f32 %v300_v39, %v281_v9 }
 0x210   :  { %v316_v61 = vmax.f32 %v308_v40, 0.0  ;;  %v317_v29 = vmax.f32 %v309_v41, 0.0 }
 0x212   :  { %v1222_v0 = vpack.c.bf16 %v317_v29, %v315_v43  ;;  %v1224_v35 = vpack.c.bf16 %v316_v61, %v314_v42  ;;  %v520_v42 = vstv %s1186_s22 }
 0x214   :  { %1223 = vmatprep.subr.bf16.mxu0 %v1222_v0 }
 0x215   :  { %1225 = vmatpush1.bf16.msra.mxu0 %v1224_v35 }
 0x218   :  { %1183 = vmatmul.mubr.msk.f32.vlgmr.msra.gmra.mrb[0].mxu0 %vm319_vm0, %v318_v1  ;;  %vm714_vm0 = vcmask 916480  }
 0x219   :  { %1128 = vmatprep.mubr.f32.mxu0 %v1371_v24 }
 0x2eb   :  { %v389_v5 = vpop.f32.mrb[0].mxu0 }
 0x2ec   :  { %v391_v6 = vpop.f32.mrb[1].mxu0 }
 0x2ed   :  { %v1591_v13 = vcombine.low %v389_v5, %v391_v6  ;;  %v1593_v45 = vcombine.high %v389_v5, %v391_v6  ;;  %v1191_v46 = vcombine.high %v391_v6, %v391_v6  ;;  %v1190_v47 = vcombine.low %v391_v6, %v391_v6 }
 0x2ef   :  { %v418_v36 = vsel %vm412_vm1, %v1593_v45, 0.0  ;;  %v419_v44 = vsel %vm412_vm1, %v1191_v46, 0.0  ;;  %v413_v15 = vsel %vm412_vm1, %v1591_v13, 0.0  ;;  %v414_v48 = vsel %vm412_vm1, %v1190_v47, 0.0 }
 0x2f0   :  { %v420_v49 = vadd.f32 %v419_v44, %v418_v36  ;;  %v415_v26 = vadd.f32 %v414_v48, %v413_v15 }
 0x2f2   :  { %421 = vadd.xlane.f32.xlu0 %v420_v49  ;;  %416 = vadd.xlane.f32.xlu1 %v415_v26 }
 0x37f   :  { %v422_v55 = vpop.xlane.xlu0 %421  ;;  %v417_v56 = vpop.xlane.xlu1 %416 }
 0x380   :  { %v424_v57 = vmul.f32 0.00390625, %v422_v55  ;;  %v423_v62 = vmul.f32 0.00390625, %v417_v56 }
 0x382   :  { %v476_v21 = vsel %vm412_vm1, %v424_v57, 0.0  ;;  %v469_v23 = vsel %vm412_vm1, %v423_v62, 0.0  ;;  %v440_v3 = vrot.slane %v424_v57, %v1602_v22  ;;  %v433_v7 = vrot.slane %v423_v62, %v1602_v22 }
 0x383   :  { %v477_v59 = vrot.slane %v476_v21, 4  ;;  %v470_v63 = vrot.slane %v469_v23, 4  ;;  %v506_v25 = vadd.f32 %v476_v21, %v469_v23  ;;  %v514_v43 = vmul.f32 %v512_v37, %v424_v57 }
 0x384   :  { %v444_v60 = vsub.f32 %v1593_v45, %v440_v3  ;;  %v443_v12 = vsub.f32 %v1591_v13, %v433_v7  ;;  %v513_v61 = vmul.f32 %v512_v37, %v423_v62  ;;  %v466_v44 = vmul.f32 %v424_v57, %v424_v57 }
 0x385   :  { %v478_v10 = vadd.f32 %v477_v59, %v476_v21  ;;  %v471_v11 = vadd.f32 %v470_v63, %v469_v23  ;;  %v507_v39 = vmul.f32 0.5, %v506_v25  ;;  %v465_v48 = vmul.f32 %v423_v62, %v423_v62 }
 0x386   :  { %v446_v17 = vmul.f32 %v444_v60, %v444_v60  ;;  %v445_v18 = vmul.f32 %v443_v12, %v443_v12 }
 0x387   :  { %v479_v14 = vrot.slane %v478_v10, 2  ;;  %v472_v16 = vrot.slane %v471_v11, 2  ;;  %v521_v1 = vmul.f32 %v520_v42, %v507_v39  ;;  %v510_v59 = vmul.f32 %v507_v39, %v507_v39 }
 0x388   :  { %v450_v27 = vcombine.high %v446_v17, %v446_v17  ;;  %v449_v28 = vcombine.high %v445_v18, %v445_v18  ;;  %v458_v32 = vsel %vm412_vm1, %v446_v17, 0.0  ;;  %v453_v2 = vsel %vm412_vm1, %v445_v18, 0.0 }
 0x389   :  { %v480_v19 = vadd.f32 %v479_v14, %v478_v10  ;;  %v473_v20 = vadd.f32 %v472_v16, %v471_v11  ;;  %v524_v18 = vstv %s1187_s23 }
 0x38a   :  { %v459_v58 = vsel %vm412_vm1, %v450_v27, 0.0  ;;  %v454_v34 = vsel %vm412_vm1, %v449_v28, 0.0 }
 0x38b   :  { %v481_v30 = vrot.slane %v480_v19, 1  ;;  %v474_v31 = vrot.slane %v473_v20, 1  ;;  %v460_v33 = vadd.f32 %v459_v58, %v458_v32  ;;  %v455_v4 = vadd.f32 %v454_v34, %v453_v2 }
 0x38d   :  { %v475_v8 = vadd.f32 %v474_v31, %v473_v20  ;;  %v482_v9 = vadd.f32 %v481_v30, %v480_v19  ;;  %461 = vadd.xlane.f32.xlu1 %v460_v33  ;;  %456 = vadd.xlane.f32.xlu0 %v455_v4  ;;  %v527_v19 = vstv %s1188_s24  ;;  %v532_v30 = vstv %s1189_s25 }
 0x38f   :  { %v484_v40 = vmul.f32 0.25, %v475_v8  ;;  %v485_v41 = vmul.f32 0.25, %v482_v9 }
 0x391   :  { %v516_v29 = vmul.f32 %v515_v38, %v484_v40  ;;  %v517_v0 = vmul.f32 %v515_v38, %v485_v41  ;;  %v503_v14 = vmul.f32 %v485_v41, %v485_v41  ;;  %v502_v17 = vmul.f32 %v484_v40, %v484_v40  ;;  %v394_v40 = vld [vmem:[%s1799_s6] sm:$0xf]  ;;  %s1373_s6 = smov 127  }
 0x393   :  { %v518_v35 = vadd.f32 %v516_v29, %v513_v61  ;;  %v519_v5 = vadd.f32 %v517_v0, %v514_v43  ;;  %v395_v0 = vld [vmem:[%s1800_s7] sm:$0xf]  ;;  %s1374_s7 = smov 1  }
 0x395   :  { %v1620_v6 = vadd.f32 %v521_v1, %v518_v35  ;;  %v523_v46 = vadd.f32 %v521_v1, %v519_v5 }
 0x41a   :  { %v462_v47 = vpop.xlane.xlu1 %461  ;;  %v457_v36 = vpop.xlane.xlu0 %456 }
 0x41b   :  { %v464_v15 = vmul.f32 0.003921569, %v462_v47  ;;  %v463_v49 = vmul.f32 0.003921569, %v457_v36 }
 0x41d   :  { %v468_v26 = vadd.f32 %v466_v44, %v464_v15  ;;  %v467_v50 = vadd.f32 %v465_v48, %v463_v49  ;;  %v526_v31 = vmul.f32 %v524_v18, %v464_v15  ;;  %v525_v58 = vmul.f32 %v524_v18, %v463_v49 }
 0x41f   :  { %v493_v51 = vsel %vm412_vm1, %v468_v26, 0.0  ;;  %v486_v53 = vsel %vm412_vm1, %v467_v50, 0.0 }
 0x420   :  { %v494_v54 = vrot.slane %v493_v51, 4  ;;  %v487_v55 = vrot.slane %v486_v53, 4  ;;  %v508_v56 = vadd.f32 %v493_v51, %v486_v53 }
 0x422   :  { %v495_v21 = vadd.f32 %v494_v54, %v493_v51  ;;  %v488_v23 = vadd.f32 %v487_v55, %v486_v53  ;;  %v509_v63 = vmul.f32 0.5, %v508_v56 }
 0x424   :  { %v496_v25 = vrot.slane %v495_v21, 2  ;;  %v489_v57 = vrot.slane %v488_v23, 2  ;;  %v511_v3 = vsub.f32 %v509_v63, %v510_v59 }
 0x426   :  { %v497_v62 = vadd.f32 %v496_v25, %v495_v21  ;;  %v490_v7 = vadd.f32 %v489_v57, %v488_v23  ;;  %v533_v34 = vmul.f32 %v532_v30, %v511_v3 }
 0x428   :  { %v498_v10 = vrot.slane %v497_v62, 1  ;;  %v491_v11 = vrot.slane %v490_v7, 1 }
 0x42a   :  { %v499_v60 = vadd.f32 %v498_v10, %v497_v62  ;;  %v492_v12 = vadd.f32 %v491_v11, %v490_v7 }
 0x42c   :  { %v501_v16 = vmul.f32 0.25, %v499_v60  ;;  %v500_v20 = vmul.f32 0.25, %v492_v12 }
 0x42e   :  { %v505_v27 = vsub.f32 %v501_v16, %v503_v14  ;;  %v504_v28 = vsub.f32 %v500_v20, %v502_v17 }
 0x430   :  { %v529_v32 = vmul.f32 %v527_v19, %v505_v27  ;;  %v528_v33 = vmul.f32 %v527_v19, %v504_v28 }
 0x432   :  { %v531_v2 = vadd.f32 %v529_v32, %v526_v31  ;;  %v530_v4 = vadd.f32 %v528_v33, %v525_v58 }
 0x434   :  { %v535_v8 = vadd.f32 %v533_v34, %v531_v2  ;;  %v534_v9 = vadd.f32 %v533_v34, %v530_v4 }
 0x436   :  { %v537_v37 = vmax.f32 %v535_v8, 0.0  ;;  %v536_v38 = vmax.f32 %v534_v9, 0.0 }
 0x438   :  { %v539_v39 = vadd.f32 1e-05, %v537_v37  ;;  %v538_v41 = vadd.f32 1e-05, %v536_v38 }
 0x43a   :  { %1300 = vrsqrt.f32 %v539_v39 }
 0x43b   :  { %1302 = vrsqrt.f32 %v538_v41 }
 0x444   :  { %v1301_v42 = vpop.eup %1300 }
 0x445   :  { %v1303_v43 = vpop.eup %1302  ;;  %v543_v61 = vmul.f32 %v1301_v42, %v394_v40 }
 0x446   :  { %v542_v29 = vmul.f32 %v1303_v43, %v394_v40 }
 0x447   :  { %554 = vperm.xlu1 %1261, %v543_v61   ;;  %v545_v35 = vmul.f32 %v543_v61, %v523_v46 }
 0x448   :  { %550 = vperm.xlu0 %1260, %v542_v29   ;;  %v544_v1 = vmul.f32 %v542_v29, %v1620_v6 }
 0x449   :  { %v547_v5 = vsub.f32 %v395_v0, %v545_v35 }
 0x44a   :  { %v546_v47 = vsub.f32 %v395_v0, %v544_v1 }
 0x44c   :  { %576 = vperm.xlu1 %1261, %v546_v47   ;;  %580 = vperm.xlu0 %1260, %v547_v5  }
 0x4c6   :  { %v555_v36 = vpop.permute.xlu1 %554 }
 0x4c7   :  { %v551_v44 = vpop.permute.xlu0 %550  ;;  %v569_v48 = vrot.slane %v555_v36, %v1602_v22 }
 0x4c8   :  { %v562_v15 = vrot.slane %v551_v44, %v1602_v22 }
 0x4c9   :  { %v573_v51 = vmul.f32 %v569_v48, %v1593_v45  ;;  %v603_v45 = vand.u32 127, %v430_v52 }
 0x4ca   :  { %v572_v50 = vmul.f32 %v562_v15, %v1591_v13 }
 0x4cb   :  { %v577_v49 = vpop.permute.xlu1 %576  ;;  %v581_v26 = vpop.permute.xlu0 %580  ;;  %v604_v59 = vadd.s32 128, %v603_v45  ;;  %v609_v63 = vand.u32 15, %v603_v45 }
 0x4cc   :  { %v588_v46 = vrot.slane %v577_v49, %v1602_v22  ;;  %v595_v6 = vrot.slane %v581_v26, %v1602_v22 }
 0x4cd   :  { %v616_v25 = vand.u32 15, %v604_v59  ;;  %vm1647_vm3 = vcmp.ge.s32.totalorder %v609_v63, 1  ;;  %vm1659_vm7 = vcmp.lt.s32.totalorder %v609_v63, 15 }
 0x4ce   :  { %v598_v53 = vadd.f32 %v588_v46, %v572_v50  ;;  %v599_v54 = vadd.f32 %v595_v6, %v573_v51  ;;  %vm1235_vm13 = vmpackc.low %vm1647_vm3, %vm1673_vm9  ;;  %v741_v6 = vld [vmem:[%s1795_s2] sm:$0xff]  ;;  %s1713_s2 = sld [smem:[#allocation3 + $0x100]] }
 0x4cf   :  { %vm1651_vm4 = vcmp.ge.s32.totalorder %v616_v25, 1  ;;  %vm1655_vm6 = vcmp.lt.s32.totalorder %v616_v25, 15  ;;  %vm1241_vm15 = vmpackc.low %vm1659_vm7, %vm1377_vm11 }
 0x4d0   :  { %v600_v55 = vmax.f32 %v598_v53, 0.0  ;;  %v601_v56 = vmax.f32 %v599_v54, 0.0  ;;  %vm1232_vm12 = vmpackc.low %vm1651_vm4, %vm1377_vm11 }
 0x4d1   :  { %vm1238_vm14 = vmpackc.low %vm1655_vm6, %vm1377_vm11 }
 0x4d2   :  { %v1637_v21 = vcombine.low %v600_v55, %v601_v56  ;;  %v1639_v23 = vcombine.high %v600_v55, %v601_v56 }
 0x4d4   :  { %652 = vrot.lane.b32.xlu0 %v1637_v21, %s1373_s6  ;;  %v1262_v13 = vpack.i.bf16 %v1639_v23, %v1637_v21 }
 0x4d6   :  { %1263 = vrot.lane.b32.xlu1 %v1262_v13, %s1374_s7 }
 0x4da   :  { %654 = vrot.lane.b32.xlu1 %v1639_v23, %s1373_s6 }
 0x4de   :  { %1268 = vrot.lane.b32.xlu1 %v1262_v13, %s1375_s10 }
 0x546   :  { %v653_v14 = vpop.permute.xlu0 %652 }
 0x548   :  { %v1264_v57 = vpop.permute.xlu1 %1263 }
 0x549   :  { %v1266_v62 = vunpack.i.h.bf16 %v1264_v57  ;;  %v1265_v7 = vunpack.i.l.bf16 %v1264_v57 }
 0x54b   :  { %v643_v11 = vsel %vm639_vm2, 0.0, %v1265_v7  ;;  %v640_v52 = vsel %vm639_vm2, %v1265_v7, %v1266_v62  ;;  %vm1244_vm2 = vmpackc.low %vm714_vm0, %vm714_vm0 }
 0x54c   :  { %v648_v16 = vsel %vm1647_vm3, %v643_v11, 0.0  ;;  %v655_v17 = vpop.permute.xlu1 %654  ;;  %v649_v18 = vsel %vm1651_vm4, %v640_v52, 0.0  ;;  %vm760_vm3 = vcmask 588800  }
 0x54d   :  { %v657_v19 = vsel %vm656_vm5, %v653_v14, %v655_v17  ;;  %v660_v20 = vsel %vm656_vm5, %v655_v17, 0.0  ;;  %v1282_v27 = vpack.i.bf16 %v649_v18, %v648_v16 }
 0x54e   :  { %v666_v28 = vsel %vm1655_vm6, %v660_v20, 0.0  ;;  %v665_v30 = vsel %vm1659_vm7, %v657_v19, 0.0  ;;  %v1237_v1 = vpack.c.bf16 %v660_v20, %v1639_v23  ;;  %v1240_v15 = vpack.c.bf16 %v657_v19, %v1637_v21 }
 0x54f   :  { %1283 = vrot.lane.b32.xlu1 %v1282_v27, %s1376_s11  ;;  %1273 = vrot.lane.b32.xlu0 %v1282_v27, %s1375_s10  ;;  %v1277_v31 = vpack.i.bf16 %v666_v28, %v665_v30 }
 0x550   :  { %v1269_v32 = vpop.permute.xlu1 %1268 }
 0x551   :  { %v1271_v58 = vunpack.i.h.bf16 %v1269_v32  ;;  %v1270_v33 = vunpack.i.l.bf16 %v1269_v32 }
 0x553   :  { %731 = vrot.lane.b32.xlu1 %v665_v30, %s1376_s11  ;;  %1278 = vrot.lane.b32.xlu0 %v1277_v31, %s1375_s10  ;;  %v684_v37 = vsel %vm673_vm8, %v1270_v33, %v1271_v58 }
 0x557   :  { %1288 = vrot.lane.b32.xlu0 %v1262_v13, %s1376_s11 }
 0x55b   :  { %733 = vrot.lane.b32.xlu0 %v666_v28, %s1376_s11 }
 0x5c1   :  { %v1274_v2 = vpop.permute.xlu0 %1273  ;;  %v1284_v0 = vpop.permute.xlu1 %1283 }
 0x5c2   :  { %v1276_v34 = vunpack.i.h.bf16 %v1274_v2  ;;  %v1275_v4 = vunpack.i.l.bf16 %v1274_v2  ;;  %v1286_v36 = vunpack.i.h.bf16 %v1284_v0  ;;  %v1285_v44 = vunpack.i.l.bf16 %v1284_v0 }
 0x5c3   :  { %v954_v0 = vstv %s1716_s14 }
 0x5c4   :  { %v674_v9 = vsel %vm673_vm8, %v1275_v4, %v1276_v34  ;;  %v1228_v41 = vpack.c.bf16 %v1270_v33, %v1275_v4  ;;  %v715_v26 = vsel %vm714_vm0, %v1285_v44, %v1286_v36 }
 0x5c5   :  { %v1279_v38 = vpop.permute.xlu0 %1278  ;;  %v1226_v39 = vpack.c.bf16 %v684_v37, %v674_v9  ;;  %v732_v46 = vpop.permute.xlu1 %731 }
 0x5c6   :  { %v1281_v40 = vunpack.i.h.bf16 %v1279_v38  ;;  %v1280_v42 = vunpack.i.l.bf16 %v1279_v38 }
 0x5c7   :  { %1227 = vmatprep.subr.bf16.mxu1 %v1226_v39 }
 0x5c8   :  { %1230 = vmatpush1.bf16.msk.msra.mxu1 %vm1229_vm10, %v1228_v41  ;;  %v696_v43 = vsel %vm673_vm8, %v1280_v42, %v1281_v40  ;;  %v1234_v35 = vpack.c.bf16 %v643_v11, %v1280_v42 }
 0x5c9   :  { %v1289_v61 = vpop.permute.xlu0 %1288  ;;  %v1231_v29 = vpack.c.bf16 %v640_v52, %v696_v43 }
 0x5ca   :  { %v1291_v5 = vunpack.i.h.bf16 %v1289_v61  ;;  %v1290_v47 = vunpack.i.l.bf16 %v1289_v61 }
 0x5cb   :  { %1233 = vmatprep.subr.msk.bf16.mxu1 %vm1232_vm12, %v1231_v29  ;;  %v951_v29 = vstv %s1713_s2 }
 0x5cc   :  { %1236 = vmatpush1.bf16.msk.msra.mxu1 %vm1235_vm13, %v1234_v35  ;;  %v1243_v48 = vpack.c.bf16 %v1291_v5, %v1286_v36  ;;  %v725_v49 = vsel %vm714_vm0, %v1290_v47, %v1291_v5  ;;  %v959_v47 = vstv %s1195_s15  ;;  %s1378_s15 = smov [#allocation8]  }
 0x5cd   :  { %1239 = vmatprep.subr.msk.bf16.mxu1 %vm1238_vm14, %v1237_v1  ;;  %v1246_v50 = vpack.c.bf16 %v725_v49, %v715_v26  ;;  %v734_v51 = vpop.permute.xlu0 %733 }
 0x5ce   :  { %v735_v53 = vsel %vm714_vm0, %v732_v46, %v734_v51 }
 0x5d0   :  { %1242 = vmatpush1.bf16.msk.msra.mxu1 %vm1241_vm15, %v1240_v15 }
 0x5d1   :  { %1245 = vmatprep.subr.msk.bf16.mxu1 %vm1244_vm2, %v1243_v48 }
 0x5d4   :  { %1247 = vmatpush1.bf16.msra.mxu1 %v1246_v50 }
 0x5d5   :  { %1217 = vmatprep.subr.msk.mxu1 %vm714_vm0, %v734_v51 }
 0x5d8   :  { %781 = vmatpush1.msra.mxu1 %v735_v53 }
 0x5d9   :  { %1192 = vmatmul.mubr.msk.f32.vlgmr.msra.gmra.mrb[0].mxu1 %vm760_vm3, %v741_v6 }
 0x6ac   :  { %v830_v54 = vpop.f32.mrb[0].mxu1 }
 0x6ad   :  { %v832_v55 = vpop.f32.mrb[1].mxu1 }
 0x6ae   :  { %v1698_v56 = vcombine.low %v830_v54, %v832_v55  ;;  %v1700_v21 = vcombine.high %v830_v54, %v832_v55  ;;  %v1199_v23 = vcombine.low %v832_v55, %v832_v55  ;;  %v1200_v13 = vcombine.high %v832_v55, %v832_v55 }
 0x6b0   :  { %v858_v45 = vsel %vm412_vm1, %v1700_v21, 0.0  ;;  %v859_v59 = vsel %vm412_vm1, %v1200_v13, 0.0  ;;  %v853_v63 = vsel %vm412_vm1, %v1698_v56, 0.0  ;;  %v854_v25 = vsel %vm412_vm1, %v1199_v23, 0.0 }
 0x6b1   :  { %v860_v57 = vadd.f32 %v859_v59, %v858_v45  ;;  %v855_v3 = vadd.f32 %v854_v25, %v853_v63 }
 0x6b3   :  { %861 = vadd.xlane.f32.xlu0 %v860_v57  ;;  %856 = vadd.xlane.f32.xlu1 %v855_v3 }
 0x740   :  { %v862_v62 = vpop.xlane.xlu0 %861  ;;  %v857_v7 = vpop.xlane.xlu1 %856 }
 0x741   :  { %v864_v10 = vmul.f32 0.00390625, %v862_v62  ;;  %v863_v11 = vmul.f32 0.00390625, %v857_v7 }
 0x743   :  { %v916_v60 = vsel %vm412_vm1, %v864_v10, 0.0  ;;  %v909_v52 = vsel %vm412_vm1, %v863_v11, 0.0  ;;  %v880_v17 = vrot.slane %v864_v10, %v1602_v22  ;;  %v873_v18 = vrot.slane %v863_v11, %v1602_v22 }
 0x744   :  { %v917_v12 = vrot.slane %v916_v60, 4  ;;  %v910_v14 = vrot.slane %v909_v52, 4  ;;  %v945_v16 = vadd.f32 %v916_v60, %v909_v52  ;;  %v953_v36 = vmul.f32 %v951_v29, %v864_v10 }
 0x745   :  { %v884_v27 = vsub.f32 %v1700_v21, %v880_v17  ;;  %v883_v28 = vsub.f32 %v1698_v56, %v873_v18  ;;  %v952_v44 = vmul.f32 %v951_v29, %v863_v11  ;;  %v906_v54 = vmul.f32 %v864_v10, %v864_v10 }
 0x746   :  { %v918_v19 = vadd.f32 %v917_v12, %v916_v60  ;;  %v911_v20 = vadd.f32 %v910_v14, %v909_v52  ;;  %v946_v35 = vmul.f32 0.5, %v945_v16  ;;  %v905_v23 = vmul.f32 %v863_v11, %v863_v11 }
 0x747   :  { %v886_v32 = vmul.f32 %v884_v27, %v884_v27  ;;  %v885_v58 = vmul.f32 %v883_v28, %v883_v28 }
 0x748   :  { %v919_v30 = vrot.slane %v918_v19, 2  ;;  %v912_v31 = vrot.slane %v911_v20, 2  ;;  %v960_v26 = vmul.f32 %v959_v47, %v946_v35  ;;  %v949_v52 = vmul.f32 %v946_v35, %v946_v35 }
 0x749   :  { %v890_v34 = vcombine.high %v886_v32, %v886_v32  ;;  %v889_v4 = vcombine.high %v885_v58, %v885_v58  ;;  %v898_v37 = vsel %vm412_vm1, %v886_v32, 0.0  ;;  %v893_v41 = vsel %vm412_vm1, %v885_v58, 0.0 }
 0x74a   :  { %v920_v33 = vadd.f32 %v919_v30, %v918_v19  ;;  %v913_v2 = vadd.f32 %v912_v31, %v911_v20  ;;  %v963_v32 = vstv %s1196_s16  ;;  %v966_v58 = vstv %s1197_s4  ;;  %s1166_s16 = sshll.u32 %s1378_s15, 4  ;;  %s1167_s16 = int_to_ptr.vmem [resolvable:$true] %s1166_s16 }
 0x74b   :  { %v899_v38 = vsel %vm412_vm1, %v890_v34, 0.0  ;;  %v894_v40 = vsel %vm412_vm1, %v889_v4, 0.0  ;;  %v971_v4 = vstv %s1198_s17  ;;  %s1340_s5 = scalar_lea.vmem %s1167_s16, 1024  ;;  %p1345_p11 = scmp.lt.s32.totalorder %s1167_s16, %s1167_s16 }
 0x74c   :  { %v921_v8 = vrot.slane %v920_v33, 1  ;;  %v914_v9 = vrot.slane %v913_v2, 1  ;;  %v900_v39 = vadd.f32 %v899_v38, %v898_v37  ;;  %v895_v42 = vadd.f32 %v894_v40, %v893_v41  ;;  %p1341_p10 = scmp.ne.s32.totalorder %s1167_s16, %s1340_s5  ;;  %p1346_p12 = scmp.lt.s32.totalorder %s1340_s5, %s1340_s5 }
 0x74e   :  { %v915_v43 = vadd.f32 %v914_v9, %v913_v2  ;;  %v922_v61 = vadd.f32 %v921_v8, %v920_v33  ;;  %901 = vadd.xlane.f32.xlu1 %v900_v39  ;;  %896 = vadd.xlane.f32.xlu0 %v895_v42  ;;  %p1347_p13 = por %p1346_p12, %p1345_p11 }
 0x750   :  { %v923_v1 = vmul.f32 0.25, %v915_v43  ;;  %v924_v5 = vmul.f32 0.25, %v922_v61  ;;  %p1348_p0 = pnand %p1347_p13, %p1341_p10 }
 0x752   :  { %v955_v15 = vmul.f32 %v954_v0, %v923_v1  ;;  %v956_v48 = vmul.f32 %v954_v0, %v924_v5  ;;  %v942_v28 = vmul.f32 %v924_v5, %v924_v5  ;;  %v941_v31 = vmul.f32 %v923_v1, %v923_v1  ;;  %v835_v1 = vld [vmem:[%s1801_s8] sm:$0xf] }
 0x754   :  { %v957_v49 = vadd.f32 %v955_v15, %v952_v44  ;;  %v958_v50 = vadd.f32 %v956_v48, %v953_v36  ;;  %v836_v15 = vld [vmem:[%s1802_s9] sm:$0xf] }
 0x756   :  { %v1724_v51 = vadd.f32 %v960_v26, %v957_v49  ;;  %v962_v46 = vadd.f32 %v960_v26, %v958_v50 }
 0x7db   :  { %v902_v6 = vpop.xlane.xlu1 %901  ;;  %v897_v53 = vpop.xlane.xlu0 %896 }
 0x7dc   :  { %v904_v55 = vmul.f32 0.003921569, %v902_v6  ;;  %v903_v13 = vmul.f32 0.003921569, %v897_v53 }
 0x7de   :  { %v908_v45 = vadd.f32 %v906_v54, %v904_v55  ;;  %v907_v59 = vadd.f32 %v905_v23, %v903_v13  ;;  %v965_v8 = vmul.f32 %v963_v32, %v904_v55  ;;  %v964_v37 = vmul.f32 %v963_v32, %v903_v13 }
 0x7e0   :  { %v932_v63 = vsel %vm412_vm1, %v908_v45, 0.0  ;;  %v925_v25 = vsel %vm412_vm1, %v907_v59, 0.0  ;;  %vm1051_vm1 = vcmask 64512  }
 0x7e1   :  { %v933_v57 = vrot.slane %v932_v63, 4  ;;  %v926_v3 = vrot.slane %v925_v25, 4  ;;  %v947_v62 = vadd.f32 %v932_v63, %v925_v25 }
 0x7e3   :  { %v934_v7 = vadd.f32 %v933_v57, %v932_v63  ;;  %v927_v60 = vadd.f32 %v926_v3, %v925_v25  ;;  %v948_v12 = vmul.f32 0.5, %v947_v62 }
 0x7e5   :  { %v935_v14 = vrot.slane %v934_v7, 2  ;;  %v928_v10 = vrot.slane %v927_v60, 2  ;;  %v950_v16 = vsub.f32 %v948_v12, %v949_v52  ;;  %v1308_v12 = vld [vmem:[%s1793_s0] sm:$0xff] }
 0x7e7   :  { %v936_v11 = vadd.f32 %v935_v14, %v934_v7  ;;  %v929_v17 = vadd.f32 %v928_v10, %v927_v60  ;;  %v972_v41 = vmul.f32 %v971_v4, %v950_v16  ;;  %v1041_v60 = vld [vmem:[%s1796_s3] sm:$0xff]  ;;  %v1309_v16 = vld [vmem:[%s1793_s0 + $0x8] sm:$0xff] }
 0x7e9   :  { %v937_v18 = vrot.slane %v936_v11, 1  ;;  %v930_v19 = vrot.slane %v929_v17, 1 }
 0x7eb   :  { %v938_v20 = vadd.f32 %v937_v18, %v936_v11  ;;  %v931_v27 = vadd.f32 %v930_v19, %v929_v17  ;;  %v1310_v17 = vld [vmem:[%s1793_s0 + $0x10] sm:$0xff] }
 0x7ed   :  { %v940_v30 = vmul.f32 0.25, %v938_v20  ;;  %v939_v33 = vmul.f32 0.25, %v931_v27  ;;  %v1311_v20 = vld [vmem:[%s1793_s0 + $0x18] sm:$0xff] }
 0x7ef   :  { %v944_v2 = vsub.f32 %v940_v30, %v942_v28  ;;  %v943_v34 = vsub.f32 %v939_v33, %v941_v31  ;;  %v1312_v30 = vld [vmem:[%s1793_s0 + $0x20] sm:$0xff] }
 0x7f1   :  { %v968_v9 = vmul.f32 %v966_v58, %v944_v2  ;;  %v967_v38 = vmul.f32 %v966_v58, %v943_v34  ;;  %v1313_v58 = vld [vmem:[%s1793_s0 + $0x28] sm:$0xff]  ;;  %v1314_v34 = vld [vmem:[%s1793_s0 + $0x30] sm:$0xff] }
 0x7f3   :  { %v970_v39 = vadd.f32 %v968_v9, %v965_v8  ;;  %v969_v40 = vadd.f32 %v967_v38, %v964_v37  ;;  %v1315_v9 = vld [vmem:[%s1793_s0 + $0x38] sm:$0xff] }
 0x7f5   :  { %v974_v42 = vadd.f32 %v972_v41, %v970_v39  ;;  %v973_v43 = vadd.f32 %v972_v41, %v969_v40 }
 0x7f7   :  { %v976_v61 = vmax.f32 %v974_v42, 0.0  ;;  %v975_v29 = vmax.f32 %v973_v43, 0.0 }
 0x7f9   :  { %v978_v0 = vadd.f32 1e-05, %v976_v61  ;;  %v977_v35 = vadd.f32 1e-05, %v975_v29 }
 0x7fb   :  { %1304 = vrsqrt.f32 %v978_v0 }
 0x7fc   :  { %1306 = vrsqrt.f32 %v977_v35 }
 0x805   :  { %v1305_v5 = vpop.eup %1304 }
 0x806   :  { %v1307_v47 = vpop.eup %1306  ;;  %v982_v36 = vmul.f32 %v1305_v5, %v835_v1 }
 0x807   :  { %v981_v44 = vmul.f32 %v1307_v47, %v835_v1 }
 0x808   :  { %993 = vperm.xlu1 %1261, %v982_v36   ;;  %v984_v48 = vmul.f32 %v982_v36, %v962_v46 }
 0x809   :  { %989 = vperm.xlu0 %1260, %v981_v44   ;;  %v983_v49 = vmul.f32 %v981_v44, %v1724_v51 }
 0x80a   :  { %v986_v26 = vsub.f32 %v836_v15, %v984_v48 }
 0x80b   :  { %v985_v50 = vsub.f32 %v836_v15, %v983_v49 }
 0x80d   :  { %1015 = vperm.xlu1 %1261, %v985_v50   ;;  %1019 = vperm.xlu0 %1260, %v986_v26  }
 0x887   :  { %v994_v6 = vpop.permute.xlu1 %993 }
 0x888   :  { %v990_v53 = vpop.permute.xlu0 %989  ;;  %v1008_v55 = vrot.slane %v994_v6, %v1602_v22 }
 0x889   :  { %v1001_v54 = vrot.slane %v990_v53, %v1602_v22 }
 0x88a   :  { %v1012_v59 = vmul.f32 %v1008_v55, %v1700_v21  ;;  %v1044_v21 = vld [vmem:[%s1796_s3 + $0x18] sm:$0xff] }
 0x88b   :  { %v1011_v45 = vmul.f32 %v1001_v54, %v1698_v56  ;;  %v1043_v56 = vld [vmem:[%s1796_s3 + $0x10] sm:$0xff] }
 0x88c   :  { %v1016_v23 = vpop.permute.xlu1 %1015  ;;  %v1020_v13 = vpop.permute.xlu0 %1019 }
 0x88d   :  { %v1027_v46 = vrot.slane %v1016_v23, %v1602_v22  ;;  %v1034_v51 = vrot.slane %v1020_v13, %v1602_v22  ;;  %v1042_v22 = vld [vmem:[%s1796_s3 + $0x8] sm:$0xff] }
 0x88f   :  { %v1037_v63 = vadd.f32 %v1027_v46, %v1011_v45  ;;  %v1038_v25 = vadd.f32 %v1034_v51, %v1012_v59 }
 0x891   :  { %v1039_v57 = vmax.f32 %v1037_v63, 0.0  ;;  %v1040_v3 = vmax.f32 %v1038_v25, 0.0 }
 0x893   :  { %v1047_v62 = vcombine.low %v1039_v57, %v1040_v3  ;;  %v1048_v7 = vcombine.high %v1039_v57, %v1040_v3 }
 0x895   :  { %1064 = vmatprep.subr.mxu0 %v1048_v7 }
 0x896   :  { %1065 = vmatpush1.msra.mxu0 %v1047_v62 }
 0x897   :  { %1201 = vmatmul.mubr.msk.f32.vlgmr.msra.gmra.mrb[2].mxu0 %vm1051_vm1, %v1041_v60 }
 0x898   :  { %1134 = vmatprep.mubr.f32.mxu0 %v1371_v24 }
 0x89b   :  { %1202 = vmatmul.mubr.msk.f32.gmra.mrb[4].mxu0 %vm1051_vm1, %v1042_v22 }
 0x89c   :  { %1140 = vmatprep.mubr.f32.mxu0 %v1371_v24 }
 0x89f   :  { %1203 = vmatmul.mubr.msk.f32.gmra.mrb[6].mxu0 %vm1051_vm1, %v1043_v56 }
 0x8a0   :  { %1146 = vmatprep.mubr.f32.mxu0 %v1371_v24 }
 0x8a3   :  { %1204 = vmatmul.mubr.msk.f32.gmra.mrb[8].mxu0 %vm1051_vm1, %v1044_v21 }
 0x96a   :  { %v1130_v52 = vpop.f32.mrb[2].mxu0 }
 0x96b   :  { %v1131_v14 = vadd.f32 %v1308_v12, %v1130_v52  ;;  %v1132_v10 = vpop.f32.mrb[3].mxu0 }
 0x96c   :  { %v1133_v11 = vadd.f32 %v1309_v16, %v1132_v10 }
 0x96d   :  { %1153 = vst [vmem:[#allocation8] sm:$0xff] %v1131_v14 }
 0x96e   :  { %1154 = vst [vmem:[#allocation8 + $0x8] sm:$0xff] %v1133_v11  ;;  %v1136_v24 = vpop.f32.mrb[4].mxu0 }
 0x96f   :  { %v1137_v18 = vadd.f32 %v1310_v17, %v1136_v24  ;;  %v1138_v19 = vpop.f32.mrb[5].mxu0 }
 0x970   :  { %v1139_v27 = vadd.f32 %v1311_v20, %v1138_v19 }
 0x971   :  { %1155 = vst [vmem:[#allocation8 + $0x10] sm:$0xff] %v1137_v18 }
 0x972   :  { %1156 = vst [vmem:[#allocation8 + $0x18] sm:$0xff] %v1139_v27  ;;  %v1142_v28 = vpop.f32.mrb[6].mxu0 }
 0x973   :  { %v1143_v31 = vadd.f32 %v1312_v30, %v1142_v28  ;;  %v1144_v32 = vpop.f32.mrb[7].mxu0 }
 0x974   :  { %v1145_v33 = vadd.f32 %v1313_v58, %v1144_v32 }
 0x975   :  { %1157 = vst [vmem:[#allocation8 + $0x20] sm:$0xff] %v1143_v31 }
 0x976   :  { %1158 = vst [vmem:[#allocation8 + $0x28] sm:$0xff] %v1145_v33  ;;  %v1148_v2 = vpop.f32.mrb[8].mxu0 }
 0x977   :  { %v1149_v4 = vadd.f32 %v1314_v34, %v1148_v2  ;;  %v1150_v8 = vpop.f32.mrb[9].mxu0 }
 0x978   :  { %v1151_v37 = vadd.f32 %v1315_v9, %v1150_v8 }
 0x979   :  { %1159 = vst [vmem:[#allocation8 + $0x30] sm:$0xff] %v1149_v4 }
 0x97a   :  { %1160 = vst [vmem:[#allocation8 + $0x38] sm:$0xff] %v1151_v37 }
 0x97b   :  { %1351 = shalt.err (!%p1348_p0)
}
 0x97c   :  { %s1352_s9 = scalar_lea.hbm %s1805_s12, 1024 }
 0x97d   :  { %p1353_p1 = scmp.ne.s32.totalorder %s1805_s12, %s1352_s9  ;;  %p1356_p2 = scmp.lt.u32.totalorder %s1352_s9, %s1805_s12 }
 0x97f   :  { %p1358_p3 = pnand %p1356_p2, %p1353_p1 }
 0x981   :  { %1361 = shalt.err (!%p1358_p3)
}
 0x982   :  { %s1379_s23 = smov 256  }
 0x983   :  { %1172 = dma.vmem_to_hbm [thread:$0]  %s1167_s16, 1024, %s1805_s12, [#allocation4], %s1379_s23, %s1379_s23, %s1375_s10  }
 0x984   :  { %1366 = dma.done.wait [#allocation4], 1024  }
 0x985   :  { %1367 = vsyncadd [#allocation4], 4294966272 }
 0x986   :  { %1176 = vsyncpa [#allocation4], 1 }
 0x987   :  { %1177 = vsyncpa [#allocation5], 1 }
 0x988   :  { %1178 = vsyncpa [#allocation7], 1 }

</bundles_post_ra>
